<compile_context>
chip_gen: v6e
topology: v6e:2x2x1
jax: 0.10.0
libtpu: 0.0.40
codegen_flags: <defaults>
</compile_context>

<pallas_src>
import functools
import numpy as np
import jax
import jax.numpy as jnp
from jax import lax
from jax.experimental import pallas as pl
from jax.experimental.pallas import tpu as pltpu

SCALE = float(np.sqrt(0.5))
NEG_INF = -1e30


# ---------------------------------------------------------------------------
# main fused decoder kernel: emb2hid -> [causal conv + GLU + attention] x L
#                            -> hid2emb   (fc_out is a separate tiled matmul)
# ---------------------------------------------------------------------------
def _decoder_kernel(
    emb_ref,            # (BB, T, E)   f32   token + pos embedding
    enc_conved_t_ref,   # (BB, E, Sp)  mxu   encoder_conved, pre-transposed
    enc_comb_ref,       # (BB, Sp, E)  mxu   encoder_combined
    e2h_w, e2h_b,       # (E, H) mxu,  (1, H) f32
    conv_wf, conv_b,    # (L, H, K*2H) mxu, (L, 1, 2H) f32  per-layer conv
    ah2e_w, ah2e_b,     # (H, E) mxu,  (1, E) f32
    ae2h_w, ae2h_b,     # (E, H) mxu,  (1, H) f32
    h2e_w, h2e_b,       # (H, E) mxu,  (1, E) f32
    conved_e_ref,       # (BB, T, E)   mxu   OUT: pre-fc_out activations
    attn_ref,           # (BB, T, Sp)  f32   OUT: last layer's attention
    *, n_layers, kernel_size, trg_pad_idx, src_len,
):
    BB, T, E = emb_ref.shape
    Sp = enc_comb_ref.shape[1]
    H = e2h_w.shape[1]
    K = kernel_size
    C2 = 2 * H
    M = BB * T                       # batch fused into the MXU M dimension
    mxu = e2h_w.dtype

    # ---- loop-invariant loads / values, hoisted out of the layer loop ----
    emb = emb_ref[...].reshape(M, E)                       # f32 (M, E)
    enc_conved_t = enc_conved_t_ref[...]                   # (BB, E, Sp) mxu
    enc_comb = enc_comb_ref[...]                           # (BB, Sp, E) mxu
    ah2e_wv = ah2e_w[...]
    ae2h_wv = ae2h_w[...]
    ah2e_bias = jnp.broadcast_to(ah2e_b[...], (M, E))      # pre-broadcast once
    ae2h_bias = jnp.broadcast_to(ae2h_b[...], (M, H))

    t_local = lax.broadcasted_iota(jnp.int32, (M, 1), 0) % T
    shift_masks = [None] + [t_local >= s for s in range(1, K)]
    if trg_pad_idx != 0:
        # contribution of the constant pad rows, per layer / tap: (L, K*2H)
        pad_rows = float(trg_pad_idx) * jnp.sum(
            conv_wf[...].astype(jnp.float32), axis=1)
    if src_len < Sp:
        src_col = lax.broadcasted_iota(jnp.int32, (1, 1, Sp), 2)

    # ---- emb2hid ----
    conv_input = jnp.dot(emb.astype(mxu), e2h_w[...],
                         preferred_element_type=jnp.float32) + e2h_b[...]   # (M,H)

    attention = None
    for l in range(n_layers):
        x = conv_input                                     # (M, H) f32

        # Causal Conv1d(H -> 2H, kernel K): ONE fused (M,H)@(H,K*2H) matmul;
        # the causal delay per tap is a sublane roll + hoisted mask on the
        # 256-lane-aligned output slice.
        big = jnp.dot(x.astype(mxu), conv_wf[l],
                      preferred_element_type=jnp.float32)   # (M, K*2H)
        bias_l = conv_b[l]                                  # (1, 2H)
        conved = None
        for k in range(K):
            yk = big[:, k * C2:(k + 1) * C2]
            shift = K - 1 - k
            if shift:
                rolled = pltpu.roll(yk, shift=shift, axis=0)
                if trg_pad_idx == 0:
                    yk = jnp.where(shift_masks[shift], rolled, 0.0)
                else:
                    yk = jnp.where(shift_masks[shift], rolled,
                                   pad_rows[l:l + 1, k * C2:(k + 1) * C2])
            # conv bias folded into the first tap's accumulation
            conved = (yk + bias_l) if conved is None else (conved + yk)

        # GLU over the channel dim (f32 epilogue); assumes H % 128 == 0 for
        # lane-aligned slices (true for the module's default hid_dim).
        conved = conved[:, :H] * jax.nn.sigmoid(conved[:, H:])             # (M,H)

        # ---- attention ----
        conved_emb = jnp.dot(conved.astype(mxu), ah2e_wv,
                             preferred_element_type=jnp.float32) + ah2e_bias
        combined = (conved_emb + emb) * SCALE                               # (M,E)
        # plain batched (T,E)@(E,Sp): encoder_conved arrives pre-transposed.
        energy = jnp.einsum("bte,bes->bts",
                            combined.reshape(BB, T, E).astype(mxu),
                            enc_conved_t,
                            preferred_element_type=jnp.float32)             # (BB,T,Sp)
        if src_len < Sp:
            energy = jnp.where(src_col < src_len, energy, NEG_INF)
        m = jnp.max(energy, axis=-1, keepdims=True)
        e = jnp.exp(energy - m)
        # NOTE: EUP approx reciprocal -> rows are not *exactly* sum-to-1.
        attention = e * pl.reciprocal(jnp.sum(e, axis=-1, keepdims=True),
                                      approx=True)
        attended = jnp.einsum("bts,bse->bte", attention.astype(mxu), enc_comb,
                              preferred_element_type=jnp.float32)           # (BB,T,E)
        attended = jnp.dot(attended.reshape(M, E).astype(mxu), ae2h_wv,
                           preferred_element_type=jnp.float32) + ae2h_bias  # (M,H)
        conved = (conved + attended) * SCALE
        # -------------------

        conv_input = (conved + x) * SCALE

    # hid2emb; fc_out runs as its own tiled-matmul pallas_call.
    conved_e = jnp.dot(conv_input.astype(mxu), h2e_w[...],
                       preferred_element_type=jnp.float32) + h2e_b[...]     # (M,E)
    conved_e_ref[...] = conved_e.reshape(BB, T, E).astype(conved_e_ref.dtype)
    attn_ref[...] = attention


# ---------------------------------------------------------------------------
# fc_out: standalone tiled matmul (grid over M and V, both parallel)
# ---------------------------------------------------------------------------
def _fc_out_kernel(x_ref, w_ref, b_ref, o_ref):
    o_ref[...] = (jnp.dot(x_ref[...], w_ref[...],
                          preferred_element_type=jnp.float32)
                  + b_ref[...]).astype(o_ref.dtype)


# ---------------------------------------------------------------------------
# helpers
# ---------------------------------------------------------------------------
def _vmem_capacity_bytes():
    try:
        cap = getattr(pltpu.get_tpu_info(), "vmem_capacity_bytes", None)
        if cap:
            return int(cap)
    except Exception:
        pass
    return 64 * 1024 * 1024           # conservative (v7x-sized) fallback


def _decoder_vmem_estimate(BB, T, E, H, Sp, K, L, mxu_bytes):
    """Rough per-grid-step VMEM bytes: double-buffered blocks + weights +
    live f32 intermediates (for budgeting / vmem_limit_bytes)."""
    blk_io = (BB * T * E * 4 + 2 * BB * Sp * E * mxu_bytes
              + BB * T * E * mxu_bytes + BB * T * Sp * 4)
    weights = ((2 * E * H + 2 * H * E + L * H * K * 2 * H) * mxu_bytes
               + (2 * H + 2 * E + L * 2 * H) * 4)
    M = BB * T
    interm = M * (K * 2 * H + 4 * H + 3 * E) * 4 + 3 * BB * T * Sp * 4
    return 2 * blk_io + 2 * weights + interm


def _auto_batch_tile(B, T, est_fn, budget):
    divs = [d for d in range(1, B + 1) if B % d == 0]
    fits = [d for d in divs if est_fn(d) <= budget] or [divs[0]]
    for d in fits:                      # MXU-sized M with >= 2 grid steps
        if d * T >= 256 and B // d >= 2:
            return d
    for d in fits:                      # MXU-sized M
        if d * T >= 256:
            return d
    d = fits[-1]
    if d == B and len(fits) >= 2:       # keep >= 2 grid steps when M is small
        d = fits[-2]
    return d


def _pick_tile(n, candidates):
    for c in candidates:
        if n % c == 0:
            return c
    return n


# ---------------------------------------------------------------------------
# wrapper
# ---------------------------------------------------------------------------
def conv_decoder_forward(trg, encoder_conved, encoder_mask, encoder_combined,
                         params, *, kernel_size=3, n_layers=1, trg_pad_idx=0,
                         batch_tile=None, mxu_dtype=jnp.bfloat16):
    """trg: (trg_len, batch) int32.  encoder_*: (batch, src_len, emb_dim).
    Returns (output (trg_len, batch, vocab) f32,
             attention (batch, trg_len, src_len) f32)."""
    del encoder_mask                      # unused by the reference forward
    if n_layers < 1:
        raise ValueError("ConvDecoder requires n_layers >= 1")

    trg_bt = trg.T                                          # (B, T)
    B, T = trg_bt.shape
    S = encoder_conved.shape[1]
    E = params["tok_emb"].shape[1]
    H = params["e2h_w"].shape[1]
    V = params["fco_w"].shape[1]
    K = kernel_size
    L = n_layers
    if params["conv_w"].shape[0] != L:
        raise ValueError("conv_w must have a leading n_layers axis")

    mxu = mxu_dtype
    mb = jnp.dtype(mxu).itemsize
    Sp = ((S + 127) // 128) * 128          # lane-dense source axis

    cap = _vmem_capacity_bytes()
    est = lambda d: _decoder_vmem_estimate(d, T, E, H, Sp, K, L, mb)
    if batch_tile is None:
        BB = _auto_batch_tile(B, T, est, int(cap * 0.6))
    else:
        BB = batch_tile
        if B % BB != 0:
            raise ValueError("batch_tile must divide batch")
    n_btiles = B // BB
    vmem_limit = max(32 << 20, min(int(1.5 * est(BB)), int(cap * 0.85)))

    # ---------- plain-JAX glue: embedding gathers, padding, transposes ----
    pos = jnp.arange(T, dtype=jnp.int32)[None, :].repeat(B, axis=0)
    embedded = (params["tok_emb"][trg_bt]
                + params["pos_emb"][pos]).astype(jnp.float32)

    enc_conved_t = jnp.transpose(
        jnp.pad(encoder_conved.astype(jnp.float32),
                ((0, 0), (0, Sp - S), (0, 0))),
        (0, 2, 1)).astype(mxu)                              # (B, E, Sp)
    enc_comb_p = jnp.pad(encoder_combined.astype(jnp.float32),
                         ((0, 0), (0, Sp - S), (0, 0))).astype(mxu)  # (B,Sp,E)

    # fuse the K conv taps into one (H, K*2H) weight per layer
    conv_wf = jnp.transpose(params["conv_w"], (0, 2, 1, 3)).reshape(L, H, K * 2 * H)

    w = lambda x: x.astype(mxu)
    b32 = lambda x: x.astype(jnp.float32)

    batch_blk = lambda shape: pl.BlockSpec(
        shape, lambda i: (i,) + (0,) * (len(shape) - 1))
    # Grid-invariant blocks (constant index_map -> Pallas skips the re-DMA).
    # TODO(synk): pipeline_mode=pl.Buffered(1) here would also drop the second
    # weight buffer on v7x; left at the default for compatibility.
    full = lambda shape: pl.BlockSpec(shape, lambda i: (0,) * len(shape))

    kernel = functools.partial(_decoder_kernel, n_layers=L, kernel_size=K,
                               trg_pad_idx=trg_pad_idx, src_len=S)

    M_total = B * T
    flops = 2 * M_total * E * H + 2 * M_total * H * E
    flops += L * (2 * M_total * H * K * 2 * H + 2 * M_total * H * E
                  + 4 * M_total * Sp * E + 2 * M_total * E * H)
    transc = L * (M_total * H + M_total * Sp + M_total)
    bytes_acc = (M_total * E * 4 + 2 * B * Sp * E * mb
                 + (2 * E * H + 2 * H * E + L * H * K * 2 * H) * mb
                 + (2 * H + 2 * E + L * 2 * H) * 4
                 + M_total * E * mb + M_total * Sp * 4)

    conved_e, attn = pl.pallas_call(
        kernel,
        out_shape=(jax.ShapeDtypeStruct((B, T, E), mxu),
                   jax.ShapeDtypeStruct((B, T, Sp), jnp.float32)),
        grid=(n_btiles,),
        in_specs=[
            batch_blk((BB, T, E)),
            batch_blk((BB, E, Sp)),
            batch_blk((BB, Sp, E)),
            full((E, H)), full((1, H)),
            full((L, H, K * 2 * H)), full((L, 1, 2 * H)),
            full((H, E)), full((1, E)),
            full((E, H)), full((1, H)),
            full((H, E)), full((1, E)),
        ],
        out_specs=[
            batch_blk((BB, T, E)),
            batch_blk((BB, T, Sp)),
        ],
        compiler_params=pltpu.CompilerParams(
            dimension_semantics=("parallel",),
            vmem_limit_bytes=vmem_limit),
        cost_estimate=pl.CostEstimate(flops=int(flops),
                                      transcendentals=int(transc),
                                      bytes_accessed=int(bytes_acc)),
    )(
        embedded, enc_conved_t, enc_comb_p,
        w(params["e2h_w"]), b32(params["e2h_b"]),
        w(conv_wf), b32(params["conv_b"]),
        w(params["ah2e_w"]), b32(params["ah2e_b"]),
        w(params["ae2h_w"]), b32(params["ae2h_b"]),
        w(params["h2e_w"]), b32(params["h2e_b"]),
    )

    # ---------- fc_out: standalone tiled matmul over (M, V) ---------------
    # rows are ordered (t, b), so the logits reshape straight to (T, B, V):
    # no (B, T, V)-sized HBM transpose.  (only the tiny (B,T,E) activations
    # are reordered here.)
    x_tb = jnp.swapaxes(conved_e, 0, 1).reshape(M_total, E)          # (M, E)
    Vp = ((V + 127) // 128) * 128
    fco_w = jnp.pad(params["fco_w"].astype(mxu), ((0, 0), (0, Vp - V)))
    fco_b = jnp.pad(params["fco_b"].astype(jnp.float32), ((0, 0), (0, Vp - V)))
    tm = _pick_tile(M_total, (512, 256, 128, 64, 32, 16, 8))
    tv = _pick_tile(Vp, (1024, 512, 256, 128))
    fc_est = 2 * ((tm * E + E * tv) * mb + tv * 4 + tm * tv * 4) + tm * tv * 4
    fc_vmem = max(32 << 20, min(int(1.5 * fc_est), int(cap * 0.85)))

    logits = pl.pallas_call(
        _fc_out_kernel,
        out_shape=jax.ShapeDtypeStruct((M_total, Vp), jnp.float32),
        grid=(M_total // tm, Vp // tv),
        in_specs=[pl.BlockSpec((tm, E), lambda i, j: (i, 0)),
                  pl.BlockSpec((E, tv), lambda i, j: (0, j)),
                  pl.BlockSpec((1, tv), lambda i, j: (0, j))],
        out_specs=pl.BlockSpec((tm, tv), lambda i, j: (i, j)),
        compiler_params=pltpu.CompilerParams(
            dimension_semantics=("parallel", "parallel"),
            vmem_limit_bytes=fc_vmem),
        cost_estimate=pl.CostEstimate(
            flops=int(2 * M_total * E * Vp), transcendentals=0,
            bytes_accessed=int(M_total * E * mb + E * Vp * mb + Vp * 4
                               + M_total * Vp * 4)),
    )(x_tb, fco_w, fco_b)

    output = logits[:, :V].reshape(T, B, V)
    return output, attn[:, :, :S]


# ---------------------------------------------------------------------------
# pure-jnp f32 reference of the same math (matches the PyTorch module, eval)
# ---------------------------------------------------------------------------
def _reference_forward(trg, encoder_conved, encoder_combined, params,
                       *, kernel_size=3, n_layers=1, trg_pad_idx=0):
    trg_bt = trg.T
    B, T = trg_bt.shape
    H = params["e2h_w"].shape[1]
    K = kernel_size
    pos = jnp.arange(T)[None, :].repeat(B, axis=0)
    embedded = params["tok_emb"][trg_bt] + params["pos_emb"][pos]
    conv_input = embedded @ params["e2h_w"] + params["e2h_b"]
    attention = None
    for l in range(n_layers):
        x = conv_input
        pad = jnp.full((B, K - 1, H), float(trg_pad_idx))
        padded = jnp.concatenate([pad, x], axis=1)
        conved = jnp.zeros((B, T, 2 * H)) + params["conv_b"][l]
        for k in range(K):
            conved = conved + padded[:, k:k + T, :] @ params["conv_w"][l, k]
        conved = conved[..., :H] * jax.nn.sigmoid(conved[..., H:])
        conved_emb = conved @ params["ah2e_w"] + params["ah2e_b"]
        combined = (conved_emb + embedded) * SCALE
        energy = jnp.einsum("bte,bse->bts", combined, encoder_conved)
        attention = jax.nn.softmax(energy, axis=-1)
        attended = jnp.einsum("bts,bse->bte", attention, encoder_combined)
        attended = attended @ params["ae2h_w"] + params["ae2h_b"]
        conved = (conved + attended) * SCALE
        conved = (conved + x) * SCALE
        conv_input = conved
    conved_e = conv_input @ params["h2e_w"] + params["h2e_b"]
    logits = conved_e @ params["fco_w"] + params["fco_b"]
    return jnp.transpose(logits, (1, 0, 2)), attention


def init_params(key, vocab_size, emb_dim, hid_dim, n_layers, kernel_size,
                max_length):
    ks = jax.random.split(key, 16)
    f = lambda k, shape, s=0.05: jax.random.normal(k, shape, jnp.float32) * s
    return {
        "tok_emb": f(ks[0], (vocab_size, emb_dim)),
        "pos_emb": f(ks[1], (max_length, emb_dim)),
        "e2h_w": f(ks[2], (emb_dim, hid_dim)),  "e2h_b": f(ks[3], (1, hid_dim)),
        "conv_w": f(ks[4], (n_layers, kernel_size, hid_dim, 2 * hid_dim)),
        "conv_b": f(ks[5], (n_layers, 1, 2 * hid_dim)),
        "ah2e_w": f(ks[6], (hid_dim, emb_dim)), "ah2e_b": f(ks[7], (1, emb_dim)),
        "ae2h_w": f(ks[8], (emb_dim, hid_dim)), "ae2h_b": f(ks[9], (1, hid_dim)),
        "h2e_w": f(ks[10], (hid_dim, emb_dim)), "h2e_b": f(ks[11], (1, emb_dim)),
        "fco_w": f(ks[12], (emb_dim, vocab_size)), "fco_b": f(ks[13], (1, vocab_size)),
    }


if __name__ == "__main__":
    # small, lane-friendly sizes
    vocab_size, emb_dim, hid_dim = 128, 128, 128
    kernel_size, n_layers, max_length = 3, 2, 100
    B, T, S = 2, 8, 16

    key = jax.random.PRNGKey(0)
    k_p, k_trg, k_ec, k_em = jax.random.split(key, 4)
    params = init_params(k_p, vocab_size, emb_dim, hid_dim, n_layers,
                         kernel_size, max_length)

    trg = jax.random.randint(k_trg, (T, B), 0, vocab_size, dtype=jnp.int32)
    encoder_conved = jax.random.normal(k_ec, (B, S, emb_dim), jnp.float32)
    encoder_combined = jax.random.normal(k_em, (B, S, emb_dim), jnp.float32)
    encoder_mask = jnp.ones((B, S), jnp.float32)   # unused by the forward

    # 1) f32 MXU path (tight check), incl. non-zero trg_pad_idx to exercise
    #    the pad-row substitution path; 2) bf16 MXU operands (looser).
    for pad_idx, mxu_dt, tol in ((0, jnp.float32, 2e-3),
                                 (2, jnp.float32, 2e-3),
                                 (0, jnp.bfloat16, 3e-2)):
        ref_out, ref_attn = _reference_forward(
            trg, encoder_conved, encoder_combined, params,
            kernel_size=kernel_size, n_layers=n_layers, trg_pad_idx=pad_idx)
        out, attn = conv_decoder_forward(
            trg, encoder_conved, encoder_mask, encoder_combined, params,
            kernel_size=kernel_size, n_layers=n_layers, trg_pad_idx=pad_idx,
            mxu_dtype=mxu_dt)
        out = jax.block_until_ready(out)
        attn = jax.block_until_ready(attn)
        assert out.shape == (T, B, vocab_size) and attn.shape == (B, T, S)
        np.testing.assert_allclose(np.asarray(out), np.asarray(ref_out),
                                   rtol=tol, atol=tol)
        np.testing.assert_allclose(np.asarray(attn), np.asarray(ref_attn),
                                   rtol=tol, atol=tol)

    print("KERNEL_OK")
</pallas_src>

<mosaic_0001>
module attributes {stable_mosaic.version = 11 : i64} {
  func.func @_decoder_kernel(%arg0: i32, %arg1: memref<1x8x128xf32, #tpu.memory_space<vmem>>, %arg2: memref<1x128x128xf32, #tpu.memory_space<vmem>>, %arg3: memref<1x128x128xf32, #tpu.memory_space<vmem>>, %arg4: memref<128x128xf32, #tpu.memory_space<vmem>>, %arg5: memref<1x128xf32, #tpu.memory_space<vmem>>, %arg6: memref<2x128x768xf32, #tpu.memory_space<vmem>>, %arg7: memref<2x1x256xf32, #tpu.memory_space<vmem>>, %arg8: memref<128x128xf32, #tpu.memory_space<vmem>>, %arg9: memref<1x128xf32, #tpu.memory_space<vmem>>, %arg10: memref<128x128xf32, #tpu.memory_space<vmem>>, %arg11: memref<1x128xf32, #tpu.memory_space<vmem>>, %arg12: memref<128x128xf32, #tpu.memory_space<vmem>>, %arg13: memref<1x128xf32, #tpu.memory_space<vmem>>, %arg14: memref<1x8x128xf32, #tpu.memory_space<vmem>>, %arg15: memref<1x8x128xf32, #tpu.memory_space<vmem>>) attributes {dimension_semantics = [#tpu.dimension_semantics<parallel>], iteration_bounds = array<i64: 2>, scalar_prefetch = 0 : i64, scratch_operands = 0 : i64, tpu.core_type = #tpu.core_type<tc>, window_params = [{transform_indices = @transform_0, window_bounds = array<i64: 1, 8, 128>}, {transform_indices = @transform_1, window_bounds = array<i64: 1, 128, 128>}, {transform_indices = @transform_2, window_bounds = array<i64: 1, 128, 128>}, {pipeline_mode = #tpu.pipeline_mode<synchronous>, transform_indices = @transform_3, window_bounds = array<i64: 128, 128>}, {pipeline_mode = #tpu.pipeline_mode<synchronous>, transform_indices = @transform_4, window_bounds = array<i64: 1, 128>}, {pipeline_mode = #tpu.pipeline_mode<synchronous>, transform_indices = @transform_5, window_bounds = array<i64: 2, 128, 768>}, {pipeline_mode = #tpu.pipeline_mode<synchronous>, transform_indices = @transform_6, window_bounds = array<i64: 2, 1, 256>}, {pipeline_mode = #tpu.pipeline_mode<synchronous>, transform_indices = @transform_7, window_bounds = array<i64: 128, 128>}, {pipeline_mode = #tpu.pipeline_mode<synchronous>, transform_indices = @transform_8, window_bounds = array<i64: 1, 128>}, {pipeline_mode = #tpu.pipeline_mode<synchronous>, transform_indices = @transform_9, window_bounds = array<i64: 128, 128>}, {pipeline_mode = #tpu.pipeline_mode<synchronous>, transform_indices = @transform_10, window_bounds = array<i64: 1, 128>}, {pipeline_mode = #tpu.pipeline_mode<synchronous>, transform_indices = @transform_11, window_bounds = array<i64: 128, 128>}, {pipeline_mode = #tpu.pipeline_mode<synchronous>, transform_indices = @transform_12, window_bounds = array<i64: 1, 128>}, {transform_indices = @transform_13, window_bounds = array<i64: 1, 8, 128>}, {transform_indices = @transform_14, window_bounds = array<i64: 1, 8, 128>}]} {
    %c0 = arith.constant 0 : index
    %c0_0 = arith.constant 0 : index
    %c0_1 = arith.constant 0 : index
    %0 = vector.load %arg1[%c0, %c0_0, %c0_1] : memref<1x8x128xf32, #tpu.memory_space<vmem>>, vector<1x8x128xf32>
    %1 = vector.shape_cast %0 : vector<1x8x128xf32> to vector<8x128xf32>
    %c0_2 = arith.constant 0 : index
    %c0_3 = arith.constant 0 : index
    %c0_4 = arith.constant 0 : index
    %2 = vector.load %arg2[%c0_2, %c0_3, %c0_4] : memref<1x128x128xf32, #tpu.memory_space<vmem>>, vector<1x128x128xf32>
    %c0_5 = arith.constant 0 : index
    %c0_6 = arith.constant 0 : index
    %c0_7 = arith.constant 0 : index
    %3 = vector.load %arg3[%c0_5, %c0_6, %c0_7] : memref<1x128x128xf32, #tpu.memory_space<vmem>>, vector<1x128x128xf32>
    %c0_8 = arith.constant 0 : index
    %c0_9 = arith.constant 0 : index
    %4 = vector.load %arg8[%c0_8, %c0_9] : memref<128x128xf32, #tpu.memory_space<vmem>>, vector<128x128xf32>
    %c0_10 = arith.constant 0 : index
    %c0_11 = arith.constant 0 : index
    %5 = vector.load %arg10[%c0_10, %c0_11] : memref<128x128xf32, #tpu.memory_space<vmem>>, vector<128x128xf32>
    %c0_12 = arith.constant 0 : index
    %c0_13 = arith.constant 0 : index
    %6 = vector.load %arg9[%c0_12, %c0_13] : memref<1x128xf32, #tpu.memory_space<vmem>>, vector<1x128xf32>
    %7 = vector.shape_cast %6 : vector<1x128xf32> to vector<1x128xf32>
    %8 = vector.broadcast %7 : vector<1x128xf32> to vector<8x128xf32>
    %c0_14 = arith.constant 0 : index
    %c0_15 = arith.constant 0 : index
    %9 = vector.load %arg11[%c0_14, %c0_15] : memref<1x128xf32, #tpu.memory_space<vmem>>, vector<1x128xf32>
    %10 = vector.shape_cast %9 : vector<1x128xf32> to vector<1x128xf32>
    %11 = vector.broadcast %10 : vector<1x128xf32> to vector<8x128xf32>
    %12 = tpu.iota {dimensions = array<i32: 0>} : vector<8x1xi32>
    %c8_i32 = arith.constant 8 : i32
    %c0_i32 = arith.constant 0 : i32
    %13 = arith.cmpi eq, %c8_i32, %c0_i32 : i32
    %c1_i32 = arith.constant 1 : i32
    %14 = arith.select %13, %c1_i32, %c8_i32 : i32
    %15 = vector.broadcast %14 : i32 to vector<8x1xi32>
    %16 = arith.remsi %12, %15 : vector<8x1xi32>
    %c0_i32_16 = arith.constant 0 : i32
    %17 = vector.broadcast %c0_i32_16 : i32 to vector<8x1xi32>
    %18 = arith.cmpi ne, %16, %17 : vector<8x1xi32>
    %c0_i32_17 = arith.constant 0 : i32
    %19 = vector.broadcast %c0_i32_17 : i32 to vector<8x1xi32>
    %20 = arith.cmpi slt, %16, %19 : vector<8x1xi32>
    %c0_i32_18 = arith.constant 0 : i32
    %21 = arith.cmpi slt, %14, %c0_i32_18 : i32
    %22 = vector.broadcast %21 : i1 to vector<8x1xi1>
    %23 = vector.broadcast %22 : vector<8x1xi1> to vector<8x1xi1>
    %24 = arith.xori %20, %23 : vector<8x1xi1>
    %25 = arith.andi %24, %18 : vector<8x1xi1>
    %26 = vector.broadcast %14 : i32 to vector<8x1xi32>
    %27 = arith.addi %16, %26 : vector<8x1xi32>
    %28 = arith.select %25, %27, %16 : vector<8x1xi1>, vector<8x1xi32>
    %c1_i32_19 = arith.constant 1 : i32
    %29 = vector.broadcast %c1_i32_19 : i32 to vector<8x1xi32>
    %30 = arith.cmpi sge, %28, %29 : vector<8x1xi32>
    %c2_i32 = arith.constant 2 : i32
    %31 = vector.broadcast %c2_i32 : i32 to vector<8x1xi32>
    %32 = arith.cmpi sge, %28, %31 : vector<8x1xi32>
    %33 = tpu.iota {dimensions = array<i32: 2>} : vector<1x1x128xi32>
    %c0_20 = arith.constant 0 : index
    %c0_21 = arith.constant 0 : index
    %34 = vector.load %arg4[%c0_20, %c0_21] : memref<128x128xf32, #tpu.memory_space<vmem>>, vector<128x128xf32>
    %cst = arith.constant dense<0.000000e+00> : vector<8x128xf32>
    %35 = tpu.matmul %1, %34, %cst {dimension_numbers = #tpu.dot_dimension_numbers<[1], [0], [0], [1], [0, 0, 1, 1], [], []>} : vector<8x128xf32>, vector<128x128xf32>, vector<8x128xf32> -> vector<8x128xf32>
    %c0_22 = arith.constant 0 : index
    %c0_23 = arith.constant 0 : index
    %36 = vector.load %arg5[%c0_22, %c0_23] : memref<1x128xf32, #tpu.memory_space<vmem>>, vector<1x128xf32>
    %37 = vector.broadcast %36 : vector<1x128xf32> to vector<8x128xf32>
    %38 = arith.addf %35, %37 : vector<8x128xf32>
    %c0_24 = arith.constant 0 : index
    %c0_25 = arith.constant 0 : index
    %c0_26 = arith.constant 0 : index
    %39 = vector.load %arg6[%c0_24, %c0_25, %c0_26] : memref<2x128x768xf32, #tpu.memory_space<vmem>>, vector<1x128x768xf32>
    %40 = vector.shape_cast %39 : vector<1x128x768xf32> to vector<128x768xf32>
    %cst_27 = arith.constant dense<0.000000e+00> : vector<8x768xf32>
    %41 = tpu.matmul %38, %40, %cst_27 {dimension_numbers = #tpu.dot_dimension_numbers<[1], [0], [0], [1], [0, 0, 1, 1], [], []>} : vector<8x128xf32>, vector<128x768xf32>, vector<8x768xf32> -> vector<8x768xf32>
    %c0_28 = arith.constant 0 : index
    %c0_29 = arith.constant 0 : index
    %c0_30 = arith.constant 0 : index
    %42 = vector.load %arg7[%c0_28, %c0_29, %c0_30] : memref<2x1x256xf32, #tpu.memory_space<vmem>>, vector<1x1x256xf32>
    %43 = vector.shape_cast %42 : vector<1x1x256xf32> to vector<1x256xf32>
    %44 = vector.extract_strided_slice %41 {offsets = [0, 0], sizes = [8, 256], strides = [1, 1]} : vector<8x768xf32> to vector<8x256xf32>
    %c2_i32_31 = arith.constant 2 : i32
    %45 = tpu.dynamic_rotate %44 by %c2_i32_31 dim 0 : vector<8x256xf32>, i32 -> vector<8x256xf32>
    %cst_32 = arith.constant 0.000000e+00 : f32
    %46 = vector.shape_cast %32 : vector<8x1xi1> to vector<8x1xi1>
    %47 = vector.broadcast %46 : vector<8x1xi1> to vector<8x256xi1>
    %48 = vector.broadcast %cst_32 : f32 to vector<8x256xf32>
    %49 = arith.select %47, %45, %48 : vector<8x256xi1>, vector<8x256xf32>
    %50 = vector.broadcast %43 : vector<1x256xf32> to vector<8x256xf32>
    %51 = arith.addf %49, %50 : vector<8x256xf32>
    %52 = vector.extract_strided_slice %41 {offsets = [0, 256], sizes = [8, 256], strides = [1, 1]} : vector<8x768xf32> to vector<8x256xf32>
    %c1_i32_33 = arith.constant 1 : i32
    %53 = tpu.dynamic_rotate %52 by %c1_i32_33 dim 0 : vector<8x256xf32>, i32 -> vector<8x256xf32>
    %cst_34 = arith.constant 0.000000e+00 : f32
    %54 = vector.shape_cast %30 : vector<8x1xi1> to vector<8x1xi1>
    %55 = vector.broadcast %54 : vector<8x1xi1> to vector<8x256xi1>
    %56 = vector.broadcast %cst_34 : f32 to vector<8x256xf32>
    %57 = arith.select %55, %53, %56 : vector<8x256xi1>, vector<8x256xf32>
    %58 = arith.addf %51, %57 : vector<8x256xf32>
    %59 = vector.extract_strided_slice %41 {offsets = [0, 512], sizes = [8, 256], strides = [1, 1]} : vector<8x768xf32> to vector<8x256xf32>
    %60 = arith.addf %58, %59 : vector<8x256xf32>
    %61 = vector.extract_strided_slice %60 {offsets = [0, 0], sizes = [8, 128], strides = [1, 1]} : vector<8x256xf32> to vector<8x128xf32>
    %62 = vector.extract_strided_slice %60 {offsets = [0, 128], sizes = [8, 128], strides = [1, 1]} : vector<8x256xf32> to vector<8x128xf32>
    %63 = arith.negf %62 : vector<8x128xf32>
    %64 = math.exp %63 : vector<8x128xf32>
    %cst_35 = arith.constant 1.000000e+00 : f32
    %65 = vector.broadcast %cst_35 : f32 to vector<8x128xf32>
    %66 = arith.addf %65, %64 : vector<8x128xf32>
    %67 = arith.divf %65, %66 : vector<8x128xf32>
    %68 = arith.mulf %61, %67 : vector<8x128xf32>
    %cst_36 = arith.constant dense<0.000000e+00> : vector<8x128xf32>
    %69 = tpu.matmul %68, %4, %cst_36 {dimension_numbers = #tpu.dot_dimension_numbers<[1], [0], [0], [1], [0, 0, 1, 1], [], []>} : vector<8x128xf32>, vector<128x128xf32>, vector<8x128xf32> -> vector<8x128xf32>
    %70 = arith.addf %69, %8 : vector<8x128xf32>
    %71 = arith.addf %70, %1 : vector<8x128xf32>
    %cst_37 = arith.constant 0.707106769 : f32
    %72 = vector.broadcast %cst_37 : f32 to vector<8x128xf32>
    %73 = arith.mulf %71, %72 : vector<8x128xf32>
    %74 = vector.shape_cast %73 : vector<8x128xf32> to vector<1x8x128xf32>
    "tpu.trace_start"() <{level = 10 : i32, message = "bte,bes->bts"}> : () -> ()
    %cst_38 = arith.constant dense<0.000000e+00> : vector<1x8x128xf32>
    %75 = tpu.matmul %74, %2, %cst_38 {dimension_numbers = #tpu.dot_dimension_numbers<[2], [1], [1], [2], [0, 0, 0, 1, 1, 2], [0], [0]>} : vector<1x8x128xf32>, vector<1x128x128xf32>, vector<1x8x128xf32> -> vector<1x8x128xf32>
    %c16_i32 = arith.constant 16 : i32
    "tpu.trace_stop"() : () -> ()
    %76 = vector.broadcast %c16_i32 : i32 to vector<1x1x128xi32>
    %77 = arith.cmpi slt, %33, %76 : vector<1x1x128xi32>
    %cst_39 = arith.constant -1.000000e+30 : f32
    %78 = vector.shape_cast %77 : vector<1x1x128xi1> to vector<1x1x128xi1>
    %79 = vector.broadcast %78 : vector<1x1x128xi1> to vector<1x8x128xi1>
    %80 = vector.broadcast %cst_39 : f32 to vector<1x8x128xf32>
    %81 = arith.select %79, %75, %80 : vector<1x8x128xi1>, vector<1x8x128xf32>
    %cst_40 = arith.constant dense<0xFF800000> : vector<1x8xf32>
    %82 = vector.multi_reduction <maximumf>, %81, %cst_40 [2] : vector<1x8x128xf32> to vector<1x8xf32>
    %83 = vector.shape_cast %82 : vector<1x8xf32> to vector<1x8x1xf32>
    %84 = vector.broadcast %83 : vector<1x8x1xf32> to vector<1x8x128xf32>
    %85 = arith.subf %81, %84 : vector<1x8x128xf32>
    %86 = math.exp %85 : vector<1x8x128xf32>
    %cst_41 = arith.constant dense<0.000000e+00> : vector<1x8xf32>
    %87 = vector.multi_reduction <add>, %86, %cst_41 [2] : vector<1x8x128xf32> to vector<1x8xf32>
    %88 = vector.shape_cast %87 : vector<1x8xf32> to vector<1x8x1xf32>
    %89 = tpu.reciprocal %88 {approx = true} : vector<1x8x1xf32> -> vector<1x8x1xf32>
    %90 = vector.broadcast %89 : vector<1x8x1xf32> to vector<1x8x128xf32>
    %91 = arith.mulf %86, %90 : vector<1x8x128xf32>
    "tpu.trace_start"() <{level = 10 : i32, message = "bts,bse->bte"}> : () -> ()
    %cst_42 = arith.constant dense<0.000000e+00> : vector<1x8x128xf32>
    %92 = tpu.matmul %91, %3, %cst_42 {dimension_numbers = #tpu.dot_dimension_numbers<[2], [1], [1], [2], [0, 0, 0, 1, 1, 2], [0], [0]>} : vector<1x8x128xf32>, vector<1x128x128xf32>, vector<1x8x128xf32> -> vector<1x8x128xf32>
    "tpu.trace_stop"() : () -> ()
    %93 = vector.shape_cast %92 : vector<1x8x128xf32> to vector<8x128xf32>
    %cst_43 = arith.constant dense<0.000000e+00> : vector<8x128xf32>
    %94 = tpu.matmul %93, %5, %cst_43 {dimension_numbers = #tpu.dot_dimension_numbers<[1], [0], [0], [1], [0, 0, 1, 1], [], []>} : vector<8x128xf32>, vector<128x128xf32>, vector<8x128xf32> -> vector<8x128xf32>
    %95 = arith.addf %94, %11 : vector<8x128xf32>
    %96 = arith.addf %68, %95 : vector<8x128xf32>
    %cst_44 = arith.constant 0.707106769 : f32
    %97 = vector.broadcast %cst_44 : f32 to vector<8x128xf32>
    %98 = arith.mulf %96, %97 : vector<8x128xf32>
    %99 = arith.addf %98, %38 : vector<8x128xf32>
    %cst_45 = arith.constant 0.707106769 : f32
    %100 = vector.broadcast %cst_45 : f32 to vector<8x128xf32>
    %101 = arith.mulf %99, %100 : vector<8x128xf32>
    %c1 = arith.constant 1 : index
    %c0_46 = arith.constant 0 : index
    %c0_47 = arith.constant 0 : index
    %102 = vector.load %arg6[%c1, %c0_46, %c0_47] : memref<2x128x768xf32, #tpu.memory_space<vmem>>, vector<1x128x768xf32>
    %103 = vector.shape_cast %102 : vector<1x128x768xf32> to vector<128x768xf32>
    %cst_48 = arith.constant dense<0.000000e+00> : vector<8x768xf32>
    %104 = tpu.matmul %101, %103, %cst_48 {dimension_numbers = #tpu.dot_dimension_numbers<[1], [0], [0], [1], [0, 0, 1, 1], [], []>} : vector<8x128xf32>, vector<128x768xf32>, vector<8x768xf32> -> vector<8x768xf32>
    %c1_49 = arith.constant 1 : index
    %c0_50 = arith.constant 0 : index
    %c0_51 = arith.constant 0 : index
    %105 = vector.load %arg7[%c1_49, %c0_50, %c0_51] : memref<2x1x256xf32, #tpu.memory_space<vmem>>, vector<1x1x256xf32>
    %106 = vector.shape_cast %105 : vector<1x1x256xf32> to vector<1x256xf32>
    %107 = vector.extract_strided_slice %104 {offsets = [0, 0], sizes = [8, 256], strides = [1, 1]} : vector<8x768xf32> to vector<8x256xf32>
    %c2_i32_52 = arith.constant 2 : i32
    %108 = tpu.dynamic_rotate %107 by %c2_i32_52 dim 0 : vector<8x256xf32>, i32 -> vector<8x256xf32>
    %cst_53 = arith.constant 0.000000e+00 : f32
    %109 = vector.shape_cast %32 : vector<8x1xi1> to vector<8x1xi1>
    %110 = vector.broadcast %109 : vector<8x1xi1> to vector<8x256xi1>
    %111 = vector.broadcast %cst_53 : f32 to vector<8x256xf32>
    %112 = arith.select %110, %108, %111 : vector<8x256xi1>, vector<8x256xf32>
    %113 = vector.broadcast %106 : vector<1x256xf32> to vector<8x256xf32>
    %114 = arith.addf %112, %113 : vector<8x256xf32>
    %115 = vector.extract_strided_slice %104 {offsets = [0, 256], sizes = [8, 256], strides = [1, 1]} : vector<8x768xf32> to vector<8x256xf32>
    %c1_i32_54 = arith.constant 1 : i32
    %116 = tpu.dynamic_rotate %115 by %c1_i32_54 dim 0 : vector<8x256xf32>, i32 -> vector<8x256xf32>
    %cst_55 = arith.constant 0.000000e+00 : f32
    %117 = vector.shape_cast %30 : vector<8x1xi1> to vector<8x1xi1>
    %118 = vector.broadcast %117 : vector<8x1xi1> to vector<8x256xi1>
    %119 = vector.broadcast %cst_55 : f32 to vector<8x256xf32>
    %120 = arith.select %118, %116, %119 : vector<8x256xi1>, vector<8x256xf32>
    %121 = arith.addf %114, %120 : vector<8x256xf32>
    %122 = vector.extract_strided_slice %104 {offsets = [0, 512], sizes = [8, 256], strides = [1, 1]} : vector<8x768xf32> to vector<8x256xf32>
    %123 = arith.addf %121, %122 : vector<8x256xf32>
    %124 = vector.extract_strided_slice %123 {offsets = [0, 0], sizes = [8, 128], strides = [1, 1]} : vector<8x256xf32> to vector<8x128xf32>
    %125 = vector.extract_strided_slice %123 {offsets = [0, 128], sizes = [8, 128], strides = [1, 1]} : vector<8x256xf32> to vector<8x128xf32>
    %126 = arith.negf %125 : vector<8x128xf32>
    %127 = math.exp %126 : vector<8x128xf32>
    %cst_56 = arith.constant 1.000000e+00 : f32
    %128 = vector.broadcast %cst_56 : f32 to vector<8x128xf32>
    %129 = arith.addf %128, %127 : vector<8x128xf32>
    %130 = arith.divf %128, %129 : vector<8x128xf32>
    %131 = arith.mulf %124, %130 : vector<8x128xf32>
    %cst_57 = arith.constant dense<0.000000e+00> : vector<8x128xf32>
    %132 = tpu.matmul %131, %4, %cst_57 {dimension_numbers = #tpu.dot_dimension_numbers<[1], [0], [0], [1], [0, 0, 1, 1], [], []>} : vector<8x128xf32>, vector<128x128xf32>, vector<8x128xf32> -> vector<8x128xf32>
    %133 = arith.addf %132, %8 : vector<8x128xf32>
    %134 = arith.addf %133, %1 : vector<8x128xf32>
    %cst_58 = arith.constant 0.707106769 : f32
    %135 = vector.broadcast %cst_58 : f32 to vector<8x128xf32>
    %136 = arith.mulf %134, %135 : vector<8x128xf32>
    %137 = vector.shape_cast %136 : vector<8x128xf32> to vector<1x8x128xf32>
    "tpu.trace_start"() <{level = 10 : i32, message = "bte,bes->bts"}> : () -> ()
    %cst_59 = arith.constant dense<0.000000e+00> : vector<1x8x128xf32>
    %138 = tpu.matmul %137, %2, %cst_59 {dimension_numbers = #tpu.dot_dimension_numbers<[2], [1], [1], [2], [0, 0, 0, 1, 1, 2], [0], [0]>} : vector<1x8x128xf32>, vector<1x128x128xf32>, vector<1x8x128xf32> -> vector<1x8x128xf32>
    %c16_i32_60 = arith.constant 16 : i32
    "tpu.trace_stop"() : () -> ()
    %139 = vector.broadcast %c16_i32_60 : i32 to vector<1x1x128xi32>
    %140 = arith.cmpi slt, %33, %139 : vector<1x1x128xi32>
    %cst_61 = arith.constant -1.000000e+30 : f32
    %141 = vector.shape_cast %140 : vector<1x1x128xi1> to vector<1x1x128xi1>
    %142 = vector.broadcast %141 : vector<1x1x128xi1> to vector<1x8x128xi1>
    %143 = vector.broadcast %cst_61 : f32 to vector<1x8x128xf32>
    %144 = arith.select %142, %138, %143 : vector<1x8x128xi1>, vector<1x8x128xf32>
    %cst_62 = arith.constant dense<0xFF800000> : vector<1x8xf32>
    %145 = vector.multi_reduction <maximumf>, %144, %cst_62 [2] : vector<1x8x128xf32> to vector<1x8xf32>
    %146 = vector.shape_cast %145 : vector<1x8xf32> to vector<1x8x1xf32>
    %147 = vector.broadcast %146 : vector<1x8x1xf32> to vector<1x8x128xf32>
    %148 = arith.subf %144, %147 : vector<1x8x128xf32>
    %149 = math.exp %148 : vector<1x8x128xf32>
    %cst_63 = arith.constant dense<0.000000e+00> : vector<1x8xf32>
    %150 = vector.multi_reduction <add>, %149, %cst_63 [2] : vector<1x8x128xf32> to vector<1x8xf32>
    %151 = vector.shape_cast %150 : vector<1x8xf32> to vector<1x8x1xf32>
    %152 = tpu.reciprocal %151 {approx = true} : vector<1x8x1xf32> -> vector<1x8x1xf32>
    %153 = vector.broadcast %152 : vector<1x8x1xf32> to vector<1x8x128xf32>
    %154 = arith.mulf %149, %153 : vector<1x8x128xf32>
    "tpu.trace_start"() <{level = 10 : i32, message = "bts,bse->bte"}> : () -> ()
    %cst_64 = arith.constant dense<0.000000e+00> : vector<1x8x128xf32>
    %155 = tpu.matmul %154, %3, %cst_64 {dimension_numbers = #tpu.dot_dimension_numbers<[2], [1], [1], [2], [0, 0, 0, 1, 1, 2], [0], [0]>} : vector<1x8x128xf32>, vector<1x128x128xf32>, vector<1x8x128xf32> -> vector<1x8x128xf32>
    "tpu.trace_stop"() : () -> ()
    %156 = vector.shape_cast %155 : vector<1x8x128xf32> to vector<8x128xf32>
    %cst_65 = arith.constant dense<0.000000e+00> : vector<8x128xf32>
    %157 = tpu.matmul %156, %5, %cst_65 {dimension_numbers = #tpu.dot_dimension_numbers<[1], [0], [0], [1], [0, 0, 1, 1], [], []>} : vector<8x128xf32>, vector<128x128xf32>, vector<8x128xf32> -> vector<8x128xf32>
    %158 = arith.addf %157, %11 : vector<8x128xf32>
    %159 = arith.addf %131, %158 : vector<8x128xf32>
    %cst_66 = arith.constant 0.707106769 : f32
    %160 = vector.broadcast %cst_66 : f32 to vector<8x128xf32>
    %161 = arith.mulf %159, %160 : vector<8x128xf32>
    %162 = arith.addf %161, %101 : vector<8x128xf32>
    %cst_67 = arith.constant 0.707106769 : f32
    %163 = vector.broadcast %cst_67 : f32 to vector<8x128xf32>
    %164 = arith.mulf %162, %163 : vector<8x128xf32>
    %c0_68 = arith.constant 0 : index
    %c0_69 = arith.constant 0 : index
    %165 = vector.load %arg12[%c0_68, %c0_69] : memref<128x128xf32, #tpu.memory_space<vmem>>, vector<128x128xf32>
    %cst_70 = arith.constant dense<0.000000e+00> : vector<8x128xf32>
    %166 = tpu.matmul %164, %165, %cst_70 {dimension_numbers = #tpu.dot_dimension_numbers<[1], [0], [0], [1], [0, 0, 1, 1], [], []>} : vector<8x128xf32>, vector<128x128xf32>, vector<8x128xf32> -> vector<8x128xf32>
    %c0_71 = arith.constant 0 : index
    %c0_72 = arith.constant 0 : index
    %167 = vector.load %arg13[%c0_71, %c0_72] : memref<1x128xf32, #tpu.memory_space<vmem>>, vector<1x128xf32>
    %168 = vector.broadcast %167 : vector<1x128xf32> to vector<8x128xf32>
    %169 = arith.addf %166, %168 : vector<8x128xf32>
    %170 = vector.shape_cast %169 : vector<8x128xf32> to vector<1x8x128xf32>
    %c0_73 = arith.constant 0 : index
    %c0_74 = arith.constant 0 : index
    %c0_75 = arith.constant 0 : index
    %171 = vector.load %arg14[%c0_73, %c0_74, %c0_75] : memref<1x8x128xf32, #tpu.memory_space<vmem>>, vector<1x8x128xf32>
    tpu.vector_store %arg14[%c0_73, %c0_74, %c0_75], %170 {strides = array<i32>} : memref<1x8x128xf32, #tpu.memory_space<vmem>>, vector<1x8x128xf32>,
    %c0_76 = arith.constant 0 : index
    %c0_77 = arith.constant 0 : index
    %c0_78 = arith.constant 0 : index
    %172 = vector.load %arg15[%c0_76, %c0_77, %c0_78] : memref<1x8x128xf32, #tpu.memory_space<vmem>>, vector<1x8x128xf32>
    tpu.vector_store %arg15[%c0_76, %c0_77, %c0_78], %154 {strides = array<i32>} : memref<1x8x128xf32, #tpu.memory_space<vmem>>, vector<1x8x128xf32>,
    return
  }
  func.func @transform_0(%arg0: i32) -> (i32, i32, i32) {
    %c0_i32 = arith.constant 0 : i32
    %c0_i32_0 = arith.constant 0 : i32
    %c0_i32_1 = arith.constant 0 : i32
    return %arg0, %c0_i32, %c0_i32_0 : i32, i32, i32
  }
  func.func @transform_1(%arg0: i32) -> (i32, i32, i32) {
    %c0_i32 = arith.constant 0 : i32
    %c0_i32_0 = arith.constant 0 : i32
    %c0_i32_1 = arith.constant 0 : i32
    return %arg0, %c0_i32, %c0_i32_0 : i32, i32, i32
  }
  func.func @transform_2(%arg0: i32) -> (i32, i32, i32) {
    %c0_i32 = arith.constant 0 : i32
    %c0_i32_0 = arith.constant 0 : i32
    %c0_i32_1 = arith.constant 0 : i32
    return %arg0, %c0_i32, %c0_i32_0 : i32, i32, i32
  }
  func.func @transform_3(%arg0: i32) -> (i32, i32) {
    %c0_i32 = arith.constant 0 : i32
    %c0_i32_0 = arith.constant 0 : i32
    %c0_i32_1 = arith.constant 0 : i32
    return %c0_i32, %c0_i32_0 : i32, i32
  }
  func.func @transform_4(%arg0: i32) -> (i32, i32) {
    %c0_i32 = arith.constant 0 : i32
    %c0_i32_0 = arith.constant 0 : i32
    %c0_i32_1 = arith.constant 0 : i32
    return %c0_i32, %c0_i32_0 : i32, i32
  }
  func.func @transform_5(%arg0: i32) -> (i32, i32, i32) {
    %c0_i32 = arith.constant 0 : i32
    %c0_i32_0 = arith.constant 0 : i32
    %c0_i32_1 = arith.constant 0 : i32
    %c0_i32_2 = arith.constant 0 : i32
    return %c0_i32, %c0_i32_0, %c0_i32_1 : i32, i32, i32
  }
  func.func @transform_6(%arg0: i32) -> (i32, i32, i32) {
    %c0_i32 = arith.constant 0 : i32
    %c0_i32_0 = arith.constant 0 : i32
    %c0_i32_1 = arith.constant 0 : i32
    %c0_i32_2 = arith.constant 0 : i32
    return %c0_i32, %c0_i32_0, %c0_i32_1 : i32, i32, i32
  }
  func.func @transform_7(%arg0: i32) -> (i32, i32) {
    %c0_i32 = arith.constant 0 : i32
    %c0_i32_0 = arith.constant 0 : i32
    %c0_i32_1 = arith.constant 0 : i32
    return %c0_i32, %c0_i32_0 : i32, i32
  }
  func.func @transform_8(%arg0: i32) -> (i32, i32) {
    %c0_i32 = arith.constant 0 : i32
    %c0_i32_0 = arith.constant 0 : i32
    %c0_i32_1 = arith.constant 0 : i32
    return %c0_i32, %c0_i32_0 : i32, i32
  }
  func.func @transform_9(%arg0: i32) -> (i32, i32) {
    %c0_i32 = arith.constant 0 : i32
    %c0_i32_0 = arith.constant 0 : i32
    %c0_i32_1 = arith.constant 0 : i32
    return %c0_i32, %c0_i32_0 : i32, i32
  }
  func.func @transform_10(%arg0: i32) -> (i32, i32) {
    %c0_i32 = arith.constant 0 : i32
    %c0_i32_0 = arith.constant 0 : i32
    %c0_i32_1 = arith.constant 0 : i32
    return %c0_i32, %c0_i32_0 : i32, i32
  }
  func.func @transform_11(%arg0: i32) -> (i32, i32) {
    %c0_i32 = arith.constant 0 : i32
    %c0_i32_0 = arith.constant 0 : i32
    %c0_i32_1 = arith.constant 0 : i32
    return %c0_i32, %c0_i32_0 : i32, i32
  }
  func.func @transform_12(%arg0: i32) -> (i32, i32) {
    %c0_i32 = arith.constant 0 : i32
    %c0_i32_0 = arith.constant 0 : i32
    %c0_i32_1 = arith.constant 0 : i32
    return %c0_i32, %c0_i32_0 : i32, i32
  }
  func.func @transform_13(%arg0: i32) -> (i32, i32, i32) {
    %c0_i32 = arith.constant 0 : i32
    %c0_i32_0 = arith.constant 0 : i32
    %c0_i32_1 = arith.constant 0 : i32
    return %arg0, %c0_i32, %c0_i32_0 : i32, i32, i32
  }
  func.func @transform_14(%arg0: i32) -> (i32, i32, i32) {
    %c0_i32 = arith.constant 0 : i32
    %c0_i32_0 = arith.constant 0 : i32
    %c0_i32_1 = arith.constant 0 : i32
    return %arg0, %c0_i32, %c0_i32_0 : i32, i32, i32
  }
}

</mosaic_0001>

<bundles_post_ra>
// kernel: tpu_custom_call.1
= control target key start
LH: loop header
LB: loop body
LE: loop exit
PB: predicated region body
PF: predicated region fallthrough
CT: control target
= control target key end

     0   :  { %s4474_s0 = inlined_call_operand.hbm [shape: f32[2,8,128], index: 0, kind: input, shape index: {}]   ;;  %s4475_s1 = inlined_call_operand.hbm [shape: f32[2,128,128], index: 1, kind: input, shape index: {}]   ;;  %s4476_s2 = inlined_call_operand.hbm [shape: f32[2,128,128], index: 2, kind: input, shape index: {}]   ;;  %s4477_s3 = inlined_call_operand.hbm [shape: f32[128,128], index: 3, kind: input, shape index: {}]   ;;  %s4478_s4 = inlined_call_operand.vmem [shape: f32[1,128], index: 4, kind: input, shape index: {}]   ;;  %s4479_s5 = inlined_call_operand.hbm [shape: f32[2,128,768], index: 5, kind: input, shape index: {}]   ;;  %s4480_s6 = inlined_call_operand.vmem [shape: f32[2,1,256], index: 6, kind: input, shape index: {}]   ;;  %s4481_s7 = inlined_call_operand.hbm [shape: f32[128,128], index: 7, kind: input, shape index: {}]   ;;  %s4482_s8 = inlined_call_operand.vmem [shape: f32[1,128], index: 8, kind: input, shape index: {}]   ;;  %s4483_s9 = inlined_call_operand.hbm [shape: f32[128,128], index: 9, kind: input, shape index: {}]   ;;  %s4484_s10 = inlined_call_operand.vmem [shape: f32[1,128], index: 10, kind: input, shape index: {}]   ;;  %s4485_s11 = inlined_call_operand.hbm [shape: f32[128,128], index: 11, kind: input, shape index: {}]   ;;  %s4486_s12 = inlined_call_operand.vmem [shape: f32[1,128], index: 12, kind: input, shape index: {}]   ;;  %s4487_s13 = inlined_call_operand.hbm [shape: f32[2,8,128], index: 13, kind: output, shape index: {0}]   ;;  %s4488_s14 = inlined_call_operand.hbm [shape: f32[2,8,128], index: 14, kind: output, shape index: {1}]  }
   0x1   :  { %4538 = sst [smem:[#allocation53_spill]] %s4475_s1 }
   0x2   :  { %4539 = sst [smem:[#allocation54_spill]] %s4477_s3 }
   0x3   :  { %4540 = sst [smem:[#allocation55_spill]] %s4478_s4 }
   0x4   :  { %4541 = sst [smem:[#allocation56_spill]] %s4480_s6 }
   0x5   :  { %4542 = sst [smem:[#allocation57_spill]] %s4481_s7 }
   0x6   :  { %4543 = sst [smem:[#allocation58_spill]] %s4482_s8 }
   0x7   :  { %4544 = sst [smem:[#allocation59_spill]] %s4484_s10 }
   0x8   :  { %4545 = sst [smem:[#allocation60_spill]] %s4486_s12 }
   0x9   :  { %4546 = sst [smem:[#allocation61_spill]] %s4487_s13 }
   0xa   :  { %4547 = sst [smem:[#allocation62_spill]] %s4488_s14 }
   0xb   :  { %20 = vsyncpa [#allocation3], 0 }
   0xc   :  { %22 = vsyncpa [#allocation3 + $0x1], 0 }
   0xd   :  { %23 = vsyncpa [#allocation6], 0 }
   0xe   :  { %25 = vsyncpa [#allocation6 + $0x1], 0 }
   0xf   :  { %26 = vsyncpa [#allocation9], 0 }
  0x10   :  { %27 = vsyncpa [#allocation12], 0 }
  0x11   :  { %28 = vsyncpa [#allocation15], 0 }
  0x12   :  { %29 = vsyncpa [#allocation4], 0 }
  0x13   :  { %31 = vsyncpa [#allocation4 + $0x1], 0 }
  0x14   :  { %32 = vsyncpa [#allocation18], 0 }
  0x15   :  { %34 = vsyncpa [#allocation18 + $0x1], 0  ;;  %s3553_s29 = smov 0   ;;  %s3555_s30 = smov 0  }
  0x16   :  { %s3557_s15 = smov 0   ;;  %s3559_s16 = smov 0  }
  0x17 LB: > { %4548 = sst [smem:[#allocation26_spill]] %s3448_s29  ;;  %s3462_s17 = smov [#allocation8]   ;;  %s3460_s16 = sphi %s3559_s16, %s4643_s16   ;;  %s3456_s15 = sphi %s3557_s15, %s4645_s15   ;;  %s3452_s30 = sphi %s3555_s30, %s4647_s30   ;;  %s3448_s29 = sphi %s3553_s29, %s4646_s29  }
  0x18   : > { %4549 = sst [smem:[#allocation27_spill]] %s3456_s15  ;;  %s397_s18 = sshll.u32 %s3462_s17, 4  ;;  %s398_s18 = int_to_ptr.vmem [resolvable:$true] %s397_s18 }
  0x19   : > { %s3574_s19 = sadd.s32 4294967295, %s3460_s16   ;;  %p2440_p0 = scmp.ge.s32.totalorder %s3460_s16, 1 }
  0x1a   : > { %p4503_p1 = scmp.eq.s32.totalorder %s3574_s19, 0  ;;  %p346_p2 = scmp.eq.s32.totalorder %s3574_s19, 1 }
  0x1b   : > { %p385_p3 = scmp.lt.s32.totalorder %s3460_s16, 3  ;;  %s3463_s21 = smov [#allocation11]  }
  0x1c   : > { %s429_s22 = sshll.u32 %s3463_s21, 4  ;;  %s3147_s25 = scalar_lea.vmem %s398_s18, 2048  ;;  %s430_s22 = int_to_ptr.vmem [resolvable:$true] %s429_s22 }
  0x1d   : > { %p3580_p4 = pnand %p2440_p0, %p385_p3  ;;  %p3148_p9 = scmp.ne.s32.totalorder %s398_s18, %s3147_s25 }
  0x1e   : > { %p3155_p12 = scmp.lt.s32.totalorder %s398_s18, %s398_s18  ;;  %p3156_p13 = scmp.lt.s32.totalorder %s3147_s25, %s3147_s25 }
  0x1f   : > { %s4550_s20 = scalar_select %p3580_p4, 1, 0 }
  0x20   : > { %p3031_p6 = pneg %p3580_p4  ;;  %p3157_p0 = por %p3156_p13, %p3155_p12 }
  0x22   : > { %p3589_p7 = pnand %p3031_p6, %p4503_p1 }
  0x24   : > { %s4551_s23 = scalar_select %p3589_p7, 1, 0 }
  0x25   : > { %p3595_p8 = pneg %p3589_p7 }
  0x27   : > { %s4552_s24 = scalar_select %p3595_p8, 1, 0 }
  0x28   : > { %p3150_p10 = pnand %p3148_p9, %p3595_p8 }
  0x2a   : > { %p3151_p11 = pneg %p3150_p10 }
  0x2c   : > { %p3158_p3 = pnand %p3157_p0, %p3151_p11 }
  0x2e   : > { %3161 = shalt.err (!%p3158_p3)
}
  0x2f   : > { %s4490_s26 = smov 128   ;;  %s4493_s27 = smov 8  }
  0x30   : > { %s4553_s3 = sld [smem:[#allocation54_spill]]  ;;  %s3173_s21 = scalar_lea.vmem %s430_s22, 2048 }
  0x31   : > { %p3174_p6 = scmp.ne.s32.totalorder %s430_s22, %s3173_s21  ;;  %p3181_p12 = scmp.lt.s32.totalorder %s430_s22, %s430_s22 }
  0x32   : > { %p3182_p11 = scmp.lt.s32.totalorder %s3173_s21, %s3173_s21 }
  0x33   : > { %p3176_p9 = pnand %p3174_p6, %p3595_p8 }
  0x34   : > { %p3183_p13 = por %p3182_p11, %p3181_p12 }
  0x35   : > { %p3177_p10 = pneg %p3176_p9 }
  0x36   : > { %3034 = dma.hbm_to_vmem [thread:$0]  (!%p3589_p7), %s4553_s3, 2048, %s398_s18, [#allocation9], %s4490_s26, %s4490_s26, %s4493_s27  }
  0x37   : > { %p3184_p0 = pnand %p3183_p13, %p3177_p10 }
  0x39   : > { %3187 = shalt.err (!%p3184_p0)
}
  0x3a   : > { %s4554_s7 = sld [smem:[#allocation57_spill]]  ;;  %s2439_s18 = sadd.s32 4294967294, %s3460_s16  }
  0x3b   : > { %s3621_s28 = sadd.s32 1, %s3460_s16   ;;  %s47_s13 = sadd.s32 1, %s3456_s15 }
  0x3c   : > { %4555 = sst [smem:[#allocation28_spill]] %s3621_s28  ;;  %s44_s17 = ssub.s32 %s3460_s16, %s3621_s28 }
  0x3d   : > { %p54_p3 = scmp.ne.s32.totalorder %s3456_s15, %s3452_s30  ;;  %p45_p6 = scmp.eq.s32.totalorder %s44_s17, 0 }
  0x3e   : > { %p55_p9 = scmp.eq.s32.totalorder %s3460_s16, 0  ;;  %p60_p10 = scmp.ne.s32.totalorder %s3452_s30, %s3448_s29 }
  0x3f   : > { %p3633_p12 = por %p346_p2, %p54_p3  ;;  %p352_p0 = scmp.eq.s32.totalorder %s2439_s18, 1 }
  0x40   : > { %3040 = dma.hbm_to_vmem [thread:$0]  (!%p3589_p7), %s4554_s7, 2048, %s430_s22, [#allocation12], %s4490_s26, %s4490_s26, %s4493_s27  }
  0x41   : > { %s4556_s21 = scalar_select %p3633_p12, 1, 0 }
  0x42   : > { %s3638_s25 = scalar_select %p45_p6, %s3456_s15, %s47_s13  }
  0x43   : > { %4557 = sst [smem:[#allocation29_spill]] %s4556_s21  ;;  %p56_p11 = por %p55_p9, %p54_p3 }
  0x44   : > { %4558 = sst [smem:[#allocation30_spill]] %s3638_s25  ;;  %p3642_p13 = por %p4503_p1, %p60_p10 }
  0x45   : > { %p3069_p5 = scmp.lt.s32.totalorder %s3460_s16, 2  ;;  %s3648_s26 = sand.u32 1, %s3456_s15  }
  0x46   : > { %s4559_s22 = scalar_select %p3642_p13, 1, 0 }
  0x47   : > { %s496_s17 = sand.u32 1, %s3460_s16   ;;  %p3651_p4 = por %p352_p0, %p60_p10 }
  0x48   : > { %p3655_p2 = pnand %p3069_p5, %p56_p11  ;;  %s4501_s3 = sshll.u32 %s3648_s26, 7 }
  0x49   : > { %s4560_s27 = scalar_select %p3651_p4, 1, 0 }
  0x4a   : > { %s4502_s7 = sshll.u32 %s3460_s16, 11  ;;  %s500_s25 = scalar_lea.vmem [#allocation5], %s4501_s3 }
  0x4b   : > { %4561 = sst [smem:[#allocation31_spill]] %s4560_s27  ;;  %s507_s18 = sshll.u32 %s500_s25, 4  ;;  %s3670_s18 = int_to_ptr.vmem [resolvable:$true] %s507_s18 }
  0x4c   : > { %s4563_s1 = sld [smem:[#allocation53_spill]]  ;;  %s3672_s27 = scalar_lea.sflag [#allocation6], %s496_s17 }
  0x4d   : > { %p3678_p3 = pneg %p3655_p2 }
  0x52   : > { %s3668_s29 = scalar_lea.hbm %s4563_s1, %s4502_s7  ;;  %s3193_s25 = scalar_lea.hbm %s4563_s1, 4096 }
  0x53   : > { %s3188_s12 = scalar_lea.hbm %s3668_s29, 2048  ;;  %p3194_p10 = scmp.lt.s32.totalorder %s3668_s29, %s4563_s1 }
  0x54   : > { %p3189_p5 = scmp.ne.s32.totalorder %s3668_s29, %s3188_s12  ;;  %p3195_p11 = scmp.lt.s32.totalorder %s3193_s25, %s3188_s12 }
  0x56   : > { %p3191_p6 = pnand %p3678_p3, %p3189_p5  ;;  %p3196_p0 = por %p3195_p11, %p3194_p10 }
  0x58   : > { %p3192_p9 = pneg %p3191_p6 }
  0x5a   : > { %p3197_p1 = pnand %p3196_p0, %p3192_p9 }
  0x5c   : > { %3200 = shalt.err (!%p3197_p1)
}
  0x5d   : > { %s3201_s17 = scalar_lea.vmem %s3670_s18, 2048  ;;  %s3466_s21 = smov [#allocation5]  }
  0x5e   : > { %p3202_p4 = scmp.ne.s32.totalorder %s3670_s18, %s3201_s17  ;;  %s3206_s15 = sshll.u32 %s3466_s21, 4  ;;  %s3207_s15 = int_to_ptr.vmem [resolvable:$false] %s3206_s15 }
  0x5f   : > { %s3208_s28 = scalar_lea.vmem %s3207_s15, 4096  ;;  %p3209_p12 = scmp.lt.s32.totalorder %s3670_s18, %s3207_s15 }
  0x60   : > { %p3204_p5 = pnand %p3202_p4, %p3678_p3  ;;  %p3210_p13 = scmp.lt.s32.totalorder %s3208_s28, %s3201_s17 }
  0x62   : > { %p3205_p6 = pneg %p3204_p5  ;;  %p3211_p7 = por %p3210_p13, %p3209_p12 }
  0x64   : > { %p3212_p8 = pnand %p3211_p7, %p3205_p6 }
  0x66   : > { %3215 = shalt.err (!%p3212_p8)
}
  0x67   : > { %s4565_s3 = smov 8   ;;  %s4566_s7 = smov 128  }
  0x68   : > { %3053 = dma.hbm_to_vmem [thread:$0]  (!%p3655_p2), %s3668_s29, 2048, %s3670_s18, %s3672_s27, %s4566_s7, %s4566_s7, %s4565_s3  }
  0x69   : > { %s4567_s12 = sshll.u32 %s3460_s16, 11  ;;  %s4568_s15 = sshll.u32 %s3648_s26, 7 }
  0x6a   : > { %s3709_s17 = scalar_lea.hbm %s4476_s2, %s4567_s12  ;;  %s3713_s28 = scalar_lea.vmem [#allocation7], %s4568_s15 }
  0x6b   : > { %s3467_s10 = smov [#allocation10]   ;;  %p4569_p4 = scmp.ne.s32.totalorder %s4552_s24, 0 }
  0x6c   : > { %s413_s8 = sshll.u32 %s3467_s10, 4  ;;  %s414_s8 = int_to_ptr.vmem [resolvable:$true] %s413_s8 }
  0x6d   : > { %s3227_s6 = scalar_lea.vmem %s414_s8, 24576  ;;  %p3235_p12 = scmp.lt.s32.totalorder %s414_s8, %s414_s8 }
  0x6e   : > { %p3228_p1 = scmp.ne.s32.totalorder %s414_s8, %s3227_s6  ;;  %p3236_p13 = scmp.lt.s32.totalorder %s3227_s6, %s3227_s6 }
  0x70   : > { %p3230_p7 = pnand %p3228_p1, %p4569_p4  ;;  %p3237_p9 = por %p3236_p13, %p3235_p12 }
  0x72   : > { %p3231_p8 = pneg %p3230_p7 }
  0x74   : > { %p3238_p10 = pnand %p3237_p9, %p3231_p8 }
  0x76   : > { %3241 = shalt.err (!%p3238_p10)
}
  0x77   : > { %s3468_s29 = smov 768   ;;  %s3469_s18 = smov 48  }
  0x78   : > { %p4570_p11 = scmp.ne.s32.totalorder %s4551_s23, 0  ;;  %s3470_s10 = smov [#allocation13]  }
  0x79   : > { %s445_s25 = sshll.u32 %s3470_s10, 4  ;;  %s3471_s15 = smov [#allocation14]   ;;  %s446_s25 = int_to_ptr.vmem [resolvable:$true] %s445_s25 }
  0x7a   : > { %3037 = dma.hbm_to_vmem [thread:$0]  (!%p4570_p11), %s4479_s5, 24576, %s414_s8, [#allocation9], %s3468_s29, %s3468_s29, %s3469_s18  }
  0x7b   : > { %s461_s1 = sshll.u32 %s3471_s15, 4  ;;  %s3253_s4 = scalar_lea.vmem %s446_s25, 2048  ;;  %s462_s1 = int_to_ptr.vmem [resolvable:$true] %s461_s1 }
  0x7c   : > { %p3254_p0 = scmp.ne.s32.totalorder %s446_s25, %s3253_s4  ;;  %p3261_p1 = scmp.lt.s32.totalorder %s446_s25, %s446_s25 }
  0x7d   : > { %p3262_p7 = scmp.lt.s32.totalorder %s3253_s4, %s3253_s4 }
  0x7e   : > { %p3256_p5 = pnand %p3254_p0, %p4569_p4 }
  0x7f   : > { %p3263_p8 = por %p3262_p7, %p3261_p1 }
  0x80   : > { %p3257_p6 = pneg %p3256_p5 }
  0x82   : > { %p3264_p12 = pnand %p3263_p8, %p3257_p6 }
  0x84   : > { %3267 = shalt.err (!%p3264_p12)
}
  0x85   : > { %3043 = dma.hbm_to_vmem [thread:$0]  (!%p4570_p11), %s4483_s9, 2048, %s446_s25, [#allocation12], %s4566_s7, %s4566_s7, %s4565_s3  }
  0x86   : > { %s3279_s29 = scalar_lea.vmem %s462_s1, 2048  ;;  %p3287_p0 = scmp.lt.s32.totalorder %s462_s1, %s462_s1 }
  0x87   : > { %p3280_p13 = scmp.ne.s32.totalorder %s462_s1, %s3279_s29  ;;  %p3288_p5 = scmp.lt.s32.totalorder %s3279_s29, %s3279_s29 }
  0x89   : > { %p3282_p9 = pnand %p3280_p13, %p4569_p4  ;;  %p3289_p6 = por %p3288_p5, %p3287_p0 }
  0x8b   : > { %p3283_p10 = pneg %p3282_p9 }
  0x8d   : > { %p3290_p1 = pnand %p3289_p6, %p3283_p10 }
  0x8f   : > { %3293 = shalt.err (!%p3290_p1)
}
  0x90   : > { %3046 = dma.hbm_to_vmem [thread:$0]  (!%p4570_p11), %s4485_s11, 2048, %s462_s1, [#allocation15], %s4566_s7, %s4566_s7, %s4565_s3  }
  0x91   : > { %s2447_s24 = sshll.u32 %s3648_s26, 3  ;;  %s2448_s12 = sshll.u32 %s3460_s16, 7 }
  0x92   : > { %s3748_s25 = scalar_lea.hbm %s4474_s0, %s2448_s12  ;;  %s4571_s23 = sshll.u32 %s3713_s28, 4  ;;  %s3752_s23 = int_to_ptr.vmem [resolvable:$true] %s4571_s23 }
  0x93   : > { %s482_s15 = scalar_lea.vmem [#allocation2], %s2447_s24  ;;  %s479_s8 = scalar_lea.sflag [#allocation3], %s3648_s26 }
  0x94   : > { %s489_s6 = sshll.u32 %s482_s15, 4  ;;  %s3294_s29 = scalar_lea.hbm %s3748_s25, 128  ;;  %s490_s6 = int_to_ptr.vmem [resolvable:$true] %s489_s6 }
  0x95   : > { %p3295_p4 = scmp.ne.s32.totalorder %s3748_s25, %s3294_s29  ;;  %s3299_s18 = scalar_lea.hbm %s4474_s0, 256 }
  0x96   : > { %p3300_p8 = scmp.lt.s32.totalorder %s3748_s25, %s4474_s0  ;;  %p3301_p12 = scmp.lt.s32.totalorder %s3299_s18, %s3294_s29 }
  0x97   : > { %p3297_p11 = pnand %p3295_p4, %p3678_p3 }
  0x98   : > { %p3302_p13 = por %p3301_p12, %p3300_p8 }
  0x99   : > { %p3298_p7 = pneg %p3297_p11 }
  0x9b   : > { %p3303_p9 = pnand %p3302_p13, %p3298_p7 }
  0x9d   : > { %3306 = shalt.err (!%p3303_p9)
}
  0x9e   : > { %s3307_s24 = scalar_lea.vmem %s490_s6, 128  ;;  %s3472_s26 = smov [#allocation2]  }
  0x9f   : > { %p3308_p10 = scmp.ne.s32.totalorder %s490_s6, %s3307_s24  ;;  %s3312_s21 = sshll.u32 %s3472_s26, 4  ;;  %s3313_s21 = int_to_ptr.vmem [resolvable:$false] %s3312_s21 }
  0xa0   : > { %s3314_s10 = scalar_lea.vmem %s3313_s21, 256  ;;  %p3315_p6 = scmp.lt.s32.totalorder %s490_s6, %s3313_s21 }
  0xa1   : > { %p3310_p0 = pnand %p3308_p10, %p3678_p3  ;;  %p3316_p1 = scmp.lt.s32.totalorder %s3314_s10, %s3307_s24 }
  0xa3   : > { %p3311_p5 = pneg %p3310_p0  ;;  %p3317_p4 = por %p3316_p1, %p3315_p6 }
  0xa5   : > { %p3318_p11 = pnand %p3317_p4, %p3311_p5 }
  0xa7   : > { %3321 = shalt.err (!%p3318_p11)
}
  0xa8   : > { %3050 = dma.hbm_to_vmem [thread:$0]  (!%p3655_p2), %s3748_s25, 128, %s490_s6, %s479_s8  }
  0xa9   : > { %s3322_s15 = scalar_lea.hbm %s3709_s17, 2048  ;;  %s3327_s4 = scalar_lea.hbm %s4476_s2, 4096 }
  0xaa   : > { %p3323_p7 = scmp.ne.s32.totalorder %s3709_s17, %s3322_s15  ;;  %p3328_p13 = scmp.lt.s32.totalorder %s3709_s17, %s4476_s2 }
  0xab   : > { %p3329_p9 = scmp.lt.s32.totalorder %s3327_s4, %s3322_s15 }
  0xac   : > { %p3325_p8 = pnand %p3323_p7, %p3678_p3 }
  0xad   : > { %p3330_p10 = por %p3329_p9, %p3328_p13 }
  0xae   : > { %p3326_p12 = pneg %p3325_p8 }
  0xb0   : > { %p3331_p0 = pnand %p3330_p10, %p3326_p12 }
  0xb2   : > { %3334 = shalt.err (!%p3331_p0)
}
  0xb3   : > { %s3335_s25 = scalar_lea.vmem %s3752_s23, 2048  ;;  %s3473_s6 = smov [#allocation7]  }
  0xb4   : > { %p3336_p5 = scmp.ne.s32.totalorder %s3752_s23, %s3335_s25  ;;  %s3340_s8 = sshll.u32 %s3473_s6, 4  ;;  %s3341_s8 = int_to_ptr.vmem [resolvable:$false] %s3340_s8 }
  0xb5   : > { %s3342_s28 = scalar_lea.vmem %s3341_s8, 4096  ;;  %p3343_p4 = scmp.lt.s32.totalorder %s3752_s23, %s3341_s8 }
  0xb6   : > { %p3338_p6 = pnand %p3336_p5, %p3678_p3  ;;  %p3344_p11 = scmp.lt.s32.totalorder %s3342_s28, %s3335_s25 }
  0xb8   : > { %p3339_p1 = pneg %p3338_p6  ;;  %p3345_p7 = por %p3344_p11, %p3343_p4 }
  0xba   : > { %p3346_p8 = pnand %p3345_p7, %p3339_p1 }
  0xbc   : > { %3349 = shalt.err (!%p3346_p8)
}
  0xbd   : > { %3056 = dma.hbm_to_vmem [thread:$0]  (!%p3655_p2), %s3709_s17, 2048, %s3752_s23, %s3672_s27, %s4566_s7, %s4566_s7, %s4565_s3  }
  0xbe   : > { %p4572_p3 = scmp.ne.s32.totalorder %s4550_s20, 0 }
  0xc0   : > { %540 = sbr.rel (%p4572_p3) target bundleno = 3373 (0xd2d), region = 72 }
  0xc5   : > { %s3798_s14 = sand.u32 1, %s3452_s30   ;;  %p4573_p12 = scmp.ne.s32.totalorder %s4559_s22, 0 }
  0xc6   : > { %s3801_s24 = sshll.u32 %s3798_s14, 3  ;;  %s543_s13 = scalar_lea.sflag [#allocation3], %s3798_s14 }
  0xc7   : > { %s546_s26 = scalar_lea.vmem [#allocation2], %s3801_s24 }
  0xc8   : > { %3419 = dma.done.wait (%p4573_p12), %s543_s13, 128  }
  0xc9   : > { %3421 = vsyncadd (%p4573_p12), %s543_s13, 4294967168  ;;  %s551_s20 = sand.u32 1, %s3574_s19   ;;  %s2457_s27 = sshll.u32 %s3798_s14, 7 }
  0xca   : > { %s552_s3 = scalar_lea.sflag [#allocation6], %s551_s20  ;;  %s3811_s7 = scalar_lea.vmem [#allocation5], %s2457_s27 }
  0xcb   : > { %3423 = dma.done.wait (%p4573_p12), %s552_s3, 4096  }
  0xcc   : > { %3425 = vsyncadd (%p4573_p12), %s552_s3, 4294963200  ;;  %s3817_s17 = scalar_lea.vmem [#allocation7], %s2457_s27  ;;  %p4574_p2 = scmp.eq.s32.totalorder %s3574_s19, 0 }
  0xce   : > { %3427 = dma.done.wait (%p4574_p2), [#allocation9], 26624   ;;  %p4575_p13 = pmov %p4574_p2 }
  0xcf   : > { %p4576_p9 = pmov %p4574_p2 }
  0xd0   : > { %3429 = vsyncadd (%p4575_p13), [#allocation9], 4294940672 }
  0xd1   : > { %3431 = dma.done.wait (%p4576_p9), [#allocation12], 4096   ;;  %p4577_p10 = pmov %p4574_p2 }
  0xd2   : > { %p4578_p0 = pmov %p4574_p2 }
  0xd3   : > { %3433 = vsyncadd (%p4577_p10), [#allocation12], 4294963200 }
  0xd4   : > { %3435 = dma.done.wait (%p4578_p0), [#allocation15], 2048   ;;  %p4579_p5 = pmov %p4578_p0 }
  0xd5   : > { %v4533_v0 = vmov 0.0   ;;  %vm3475_vm0 = vmmov 0   ;;  %v756_v1 = vld [vmem:[#allocation8 + $0x78] sm:$0xff]  ;;  %v755_v2 = vld [vmem:[#allocation8 + $0x70] sm:$0xff]  ;;  %v754_v3 = vld [vmem:[#allocation8 + $0x68] sm:$0xff]  ;;  %s4580_s21 = sld [smem:[#allocation55_spill]] }
  0xd6   : > { %3437 = vsyncadd (%p4579_p5), [#allocation15], 4294965248  ;;  %2651 = vmatprep.subr.mxu0 %v4533_v0  ;;  %2683 = vmatprep.mubr.msk.f32.mxu0 %vm3475_vm0, %v4533_v0  ;;  %v753_v4 = vld [vmem:[#allocation8 + $0x60] sm:$0xff]  ;;  %v925_v5 = vld [vmem:[#allocation10 + $0x2d8] sm:$0xff]  ;;  %s4581_s29 = sld [smem:[#allocation56_spill]]  ;;  %s2475_s27 = sshll.u32 %s3574_s19, 7 }
  0xd7   : > { %994 = vmatprep.mubr.f32.mxu1 %v4533_v0  ;;  %2652 = vmatpush3.msra.mxu0 %v756_v1  ;;  %v752_v6 = vld [vmem:[#allocation8 + $0x58] sm:$0xff]  ;;  %v924_v7 = vld [vmem:[#allocation10 + $0x2d0] sm:$0xff]  ;;  %v919_v8 = vld [vmem:[#allocation10 + $0x2a8] sm:$0xff]  ;;  %s4587_s12 = sld [smem:[#allocation58_spill]]  ;;  %s3476_s15 = smov [#allocation17]  }
  0xd8   : > { %2653 = vmatprep.subr.mxu0 %v4533_v0  ;;  %930 = vmatprep.subr.mxu1 %v925_v5  ;;  %v918_v9 = vld [vmem:[#allocation10 + $0x2a0] sm:$0xff]  ;;  %v751_v10 = vld [vmem:[#allocation8 + $0x50] sm:$0xff]  ;;  %v913_v11 = vld [vmem:[#allocation10 + $0x278] sm:$0xff]  ;;  %s4610_s8 = sld [smem:[#allocation59_spill]] }
  0xd9   : > { %2654 = vmatpush3.msra.mxu0 %v755_v2  ;;  %931 = vmatpush1.msra.mxu1 %v924_v7  ;;  %v912_v12 = vld [vmem:[#allocation10 + $0x270] sm:$0xff]  ;;  %v907_v13 = vld [vmem:[#allocation10 + $0x248] sm:$0xff]  ;;  %v906_v15 = vld [vmem:[#allocation10 + $0x240] sm:$0xff]  ;;  %s4634_s20 = sld [smem:[#allocation29_spill]] }
  0xda   : > { %2655 = vmatprep.subr.mxu0 %v4533_v0  ;;  %932 = vmatprep.subr.mxu1 %v919_v8  ;;  %v750_v14 = vld [vmem:[#allocation8 + $0x48] sm:$0xff]  ;;  %v901_v16 = vld [vmem:[#allocation10 + $0x218] sm:$0xff]  ;;  %v749_v17 = vld [vmem:[#allocation8 + $0x40] sm:$0xff] }
  0xdb   : > { %2656 = vmatpush3.msra.mxu0 %v754_v3  ;;  %933 = vmatpush1.msra.mxu1 %v918_v9  ;;  %v900_v18 = vld [vmem:[#allocation10 + $0x210] sm:$0xff]  ;;  %v895_v19 = vld [vmem:[#allocation10 + $0x1e8] sm:$0xff]  ;;  %v748_v20 = vld [vmem:[#allocation8 + $0x38] sm:$0xff] }
  0xdc   : > { %2657 = vmatprep.subr.mxu0 %v4533_v0  ;;  %934 = vmatprep.subr.mxu1 %v913_v11  ;;  %v894_v21 = vld [vmem:[#allocation10 + $0x1e0] sm:$0xff]  ;;  %v889_v22 = vld [vmem:[#allocation10 + $0x1b8] sm:$0xff]  ;;  %v747_v23 = vld [vmem:[#allocation8 + $0x30] sm:$0xff]  ;;  %s4582_s1 = smov %s4581_s29 }
  0xdd   : > { %2658 = vmatpush3.msra.mxu0 %v753_v4  ;;  %935 = vmatpush1.msra.mxu1 %v912_v12  ;;  %v888_v24 = vld [vmem:[#allocation10 + $0x1b0] sm:$0xff]  ;;  %v883_v25 = vld [vmem:[#allocation10 + $0x188] sm:$0xff]  ;;  %v882_v27 = vld [vmem:[#allocation10 + $0x180] sm:$0xff] }
  0xde   : > { %2659 = vmatprep.subr.mxu0 %v4533_v0  ;;  %936 = vmatprep.subr.mxu1 %v907_v13  ;;  %v746_v26 = vld [vmem:[#allocation8 + $0x28] sm:$0xff]  ;;  %v877_v28 = vld [vmem:[#allocation10 + $0x158] sm:$0xff]  ;;  %v745_v29 = vld [vmem:[#allocation8 + $0x20] sm:$0xff] }
  0xdf   : > { %2660 = vmatpush3.msra.mxu0 %v752_v6  ;;  %937 = vmatpush1.msra.mxu1 %v906_v15  ;;  %v876_v30 = vld [vmem:[#allocation10 + $0x150] sm:$0xff]  ;;  %v871_v31 = vld [vmem:[#allocation10 + $0x128] sm:$0xff]  ;;  %v744_v32 = vld [vmem:[#allocation8 + $0x18] sm:$0xff]  ;;  %p4636_p1 = scmp.ne.s32.totalorder %s4634_s20, 0 }
  0xe0   : > { %2661 = vmatprep.subr.mxu0 %v4533_v0  ;;  %938 = vmatprep.subr.mxu1 %v901_v16  ;;  %v870_v33 = vld [vmem:[#allocation10 + $0x120] sm:$0xff]  ;;  %v865_v34 = vld [vmem:[#allocation10 + $0xf8] sm:$0xff]  ;;  %v743_v35 = vld [vmem:[#allocation8 + $0x10] sm:$0xff] }
  0xe1   : > { %2662 = vmatpush3.msra.mxu0 %v751_v10  ;;  %939 = vmatpush1.msra.mxu1 %v900_v18  ;;  %v864_v36 = vld [vmem:[#allocation10 + $0xf0] sm:$0xff]  ;;  %v859_v37 = vld [vmem:[#allocation10 + $0xc8] sm:$0xff]  ;;  %v858_v39 = vld [vmem:[#allocation10 + $0xc0] sm:$0xff] }
  0xe2   : > { %2663 = vmatprep.subr.mxu0 %v4533_v0  ;;  %940 = vmatprep.subr.mxu1 %v895_v19  ;;  %v742_v38 = vld [vmem:[#allocation8 + $0x8] sm:$0xff]  ;;  %v853_v40 = vld [vmem:[#allocation10 + $0x98] sm:$0xff]  ;;  %v741_v41 = vld [vmem:[#allocation8] sm:$0xff] }
  0xe3   : > { %2664 = vmatpush3.msra.mxu0 %v750_v14  ;;  %941 = vmatpush1.msra.mxu1 %v894_v21  ;;  %v852_v42 = vld [vmem:[#allocation10 + $0x90] sm:$0xff]  ;;  %v927_v44 = vld [vmem:[#allocation10 + $0x2e8] sm:$0xff]  ;;  %v926_v45 = vld [vmem:[#allocation10 + $0x2e0] sm:$0xff] }
  0xe4   : > { %2665 = vmatprep.subr.mxu0 %v4533_v0  ;;  %942 = vmatprep.subr.mxu1 %v889_v22  ;;  %v3851_v43 = vld [vmem:[%s546_s26] sm:$0xff]  ;;  %v847_v46 = vld [vmem:[#allocation10 + $0x68] sm:$0xff]  ;;  %v846_v48 = vld [vmem:[#allocation10 + $0x60] sm:$0xff] }
  0xe5   : > { %2666 = vmatpush3.msra.mxu0 %v749_v17  ;;  %943 = vmatpush1.msra.mxu1 %v888_v24  ;;  %v921_v47 = vld [vmem:[#allocation10 + $0x2b8] sm:$0xff]  ;;  %v920_v49 = vld [vmem:[#allocation10 + $0x2b0] sm:$0xff]  ;;  %v915_v51 = vld [vmem:[#allocation10 + $0x288] sm:$0xff] }
  0xe6   : > { %2667 = vmatprep.subr.mxu0 %v4533_v0  ;;  %944 = vmatprep.subr.mxu1 %v883_v25  ;;  %v841_v50 = vld [vmem:[#allocation10 + $0x38] sm:$0xff]  ;;  %v840_v52 = vld [vmem:[#allocation10 + $0x30] sm:$0xff]  ;;  %v914_v53 = vld [vmem:[#allocation10 + $0x280] sm:$0xff] }
  0xe7   : > { %2668 = vmatpush3.msra.mxu0 %v748_v20  ;;  %945 = vmatpush1.msra.mxu1 %v882_v27  ;;  %v909_v54 = vld [vmem:[#allocation10 + $0x258] sm:$0xff]  ;;  %v908_v55 = vld [vmem:[#allocation10 + $0x250] sm:$0xff]  ;;  %v903_v56 = vld [vmem:[#allocation10 + $0x228] sm:$0xff] }
  0xe8   : > { %2669 = vmatprep.subr.mxu0 %v4533_v0  ;;  %946 = vmatprep.subr.mxu1 %v877_v28  ;;  %v902_v57 = vld [vmem:[#allocation10 + $0x220] sm:$0xff]  ;;  %v897_v58 = vld [vmem:[#allocation10 + $0x1f8] sm:$0xff]  ;;  %v896_v59 = vld [vmem:[#allocation10 + $0x1f0] sm:$0xff] }
  0xe9   : > { %2670 = vmatpush3.msra.mxu0 %v747_v23  ;;  %947 = vmatpush1.msra.mxu1 %v876_v30  ;;  %v891_v60 = vld [vmem:[#allocation10 + $0x1c8] sm:$0xff]  ;;  %v890_v61 = vld [vmem:[#allocation10 + $0x1c0] sm:$0xff]  ;;  %v885_v62 = vld [vmem:[#allocation10 + $0x198] sm:$0xff] }
  0xea   : > { %2671 = vmatprep.subr.mxu0 %v4533_v0  ;;  %948 = vmatprep.subr.mxu1 %v871_v31  ;;  %v884_v63 = vld [vmem:[#allocation10 + $0x190] sm:$0xff]  ;;  %v879_v1 = vld [vmem:[#allocation10 + $0x168] sm:$0xff]  ;;  %v878_v2 = vld [vmem:[#allocation10 + $0x160] sm:$0xff] }
  0xeb   : > { %2672 = vmatpush3.msra.mxu0 %v746_v26  ;;  %949 = vmatpush1.msra.mxu1 %v870_v33  ;;  %v873_v3 = vld [vmem:[#allocation10 + $0x138] sm:$0xff]  ;;  %v872_v4 = vld [vmem:[#allocation10 + $0x130] sm:$0xff]  ;;  %v867_v5 = vld [vmem:[#allocation10 + $0x108] sm:$0xff] }
  0xec   : > { %2673 = vmatprep.subr.mxu0 %v4533_v0  ;;  %950 = vmatprep.subr.mxu1 %v865_v34  ;;  %v866_v6 = vld [vmem:[#allocation10 + $0x100] sm:$0xff]  ;;  %v861_v7 = vld [vmem:[#allocation10 + $0xd8] sm:$0xff]  ;;  %v860_v8 = vld [vmem:[#allocation10 + $0xd0] sm:$0xff] }
  0xed   : > { %2674 = vmatpush3.msra.mxu0 %v745_v29  ;;  %951 = vmatpush1.msra.mxu1 %v864_v36  ;;  %v855_v9 = vld [vmem:[#allocation10 + $0xa8] sm:$0xff]  ;;  %v854_v10 = vld [vmem:[#allocation10 + $0xa0] sm:$0xff]  ;;  %v849_v11 = vld [vmem:[#allocation10 + $0x78] sm:$0xff] }
  0xee   : > { %2675 = vmatprep.subr.mxu0 %v4533_v0  ;;  %952 = vmatprep.subr.mxu1 %v859_v37  ;;  %v848_v12 = vld [vmem:[#allocation10 + $0x70] sm:$0xff]  ;;  %v843_v13 = vld [vmem:[#allocation10 + $0x48] sm:$0xff]  ;;  %v842_v15 = vld [vmem:[#allocation10 + $0x40] sm:$0xff] }
  0xef   : > { %2676 = vmatpush3.msra.mxu0 %v744_v32  ;;  %953 = vmatpush1.msra.mxu1 %v858_v39  ;;  %v835_v14 = vld [vmem:[#allocation10 + $0x8] sm:$0xff]  ;;  %v834_v16 = vld [vmem:[#allocation10] sm:$0xff]  ;;  %v837_v17 = vld [vmem:[#allocation10 + $0x18] sm:$0xff] }
  0xf0   : > { %2677 = vmatprep.subr.mxu0 %v4533_v0  ;;  %954 = vmatprep.subr.mxu1 %v853_v40  ;;  %v836_v18 = vld [vmem:[#allocation10 + $0x10] sm:$0xff]  ;;  %v929_v19 = vld [vmem:[#allocation10 + $0x2f8] sm:$0xff]  ;;  %v923_v25 = vld [vmem:[#allocation10 + $0x2c8] sm:$0xff] }
  0xf1   : > { %2678 = vmatpush3.msra.mxu0 %v743_v35  ;;  %955 = vmatpush1.msra.mxu1 %v852_v42  ;;  %v2468_v20 = vld [vmem:[%s4580_s21] ss:$0 sm:$0xff]  ;;  %v922_v26 = vld [vmem:[#allocation10 + $0x2c0] sm:$0xff]  ;;  %v917_v27 = vld [vmem:[#allocation10 + $0x298] sm:$0xff]  ;;  %s2220_s21 = scalar_lea.sflag [#allocation18], %s3798_s14 }
  0xf2   : > { %2679 = vmatprep.subr.mxu0 %v4533_v0  ;;  %956 = vmatprep.subr.mxu1 %v847_v46  ;;  %v928_v23 = vld [vmem:[#allocation10 + $0x2f0] sm:$0xff]  ;;  %v911_v29 = vld [vmem:[#allocation10 + $0x268] sm:$0xff]  ;;  %v910_v30 = vld [vmem:[#allocation10 + $0x260] sm:$0xff] }
  0xf3   : > { %2680 = vmatpush3.msra.mxu0 %v742_v38  ;;  %957 = vmatpush1.msra.mxu1 %v846_v48  ;;  %v916_v28 = vld [vmem:[#allocation10 + $0x290] sm:$0xff]  ;;  %v905_v31 = vld [vmem:[#allocation10 + $0x238] sm:$0xff]  ;;  %v899_v33 = vld [vmem:[#allocation10 + $0x208] sm:$0xff] }
  0xf4   : > { %2681 = vmatprep.subr.mxu0 %v4533_v0  ;;  %958 = vmatprep.subr.mxu1 %v841_v50  ;;  %v904_v32 = vld [vmem:[#allocation10 + $0x230] sm:$0xff]  ;;  %v898_v34 = vld [vmem:[#allocation10 + $0x200] sm:$0xff]  ;;  %v893_v35 = vld [vmem:[#allocation10 + $0x1d8] sm:$0xff] }
  0xf5   : > { %2682 = vmatpush3.msra.mxu0 %v741_v41  ;;  %959 = vmatpush1.msra.mxu1 %v840_v52  ;;  %v892_v36 = vld [vmem:[#allocation10 + $0x1d0] sm:$0xff]  ;;  %v887_v37 = vld [vmem:[#allocation10 + $0x1a8] sm:$0xff]  ;;  %v886_v38 = vld [vmem:[#allocation10 + $0x1a0] sm:$0xff] }
  0xf6   : > { %2684 = vmatmul.mubr.f32.vlgmr.msra.gmra.mxu0 %v3851_v43  ;;  %1001 = vmatprep.subr.mxu0 %v927_v44  ;;  %v881_v39 = vld [vmem:[#allocation10 + $0x178] sm:$0xff]  ;;  %v880_v40 = vld [vmem:[#allocation10 + $0x170] sm:$0xff]  ;;  %v875_v41 = vld [vmem:[#allocation10 + $0x148] sm:$0xff] }
  0xf7   : > { %1002 = vmatpush1.msra.mxu0 %v926_v45  ;;  %1065 = vmatprep.mubr.f32.mxu0 %v4533_v0  ;;  %v874_v42 = vld [vmem:[#allocation10 + $0x140] sm:$0xff]  ;;  %v869_v44 = vld [vmem:[#allocation10 + $0x118] sm:$0xff]  ;;  %v868_v45 = vld [vmem:[#allocation10 + $0x110] sm:$0xff] }
  0xf8   : > { %1003 = vmatprep.subr.mxu0 %v921_v47  ;;  %960 = vmatprep.subr.mxu1 %v835_v14  ;;  %v863_v46 = vld [vmem:[#allocation10 + $0xe8] sm:$0xff]  ;;  %v862_v47 = vld [vmem:[#allocation10 + $0xe0] sm:$0xff]  ;;  %v857_v48 = vld [vmem:[#allocation10 + $0xb8] sm:$0xff] }
  0xf9   : > { %1004 = vmatpush1.msra.mxu0 %v920_v49  ;;  %961 = vmatpush1.msra.mxu1 %v834_v16  ;;  %v856_v49 = vld [vmem:[#allocation10 + $0xb0] sm:$0xff]  ;;  %v851_v50 = vld [vmem:[#allocation10 + $0x88] sm:$0xff]  ;;  %v845_v52 = vld [vmem:[#allocation10 + $0x58] sm:$0xff] }
  0xfa   : > { %1005 = vmatprep.subr.mxu0 %v915_v51  ;;  %1072 = vmatprep.subr.mxu1 %v929_v19  ;;  %v850_v51 = vld [vmem:[#allocation10 + $0x80] sm:$0xff]  ;;  %v3959_v14 = vld [vmem:[%s3811_s7 + $0x50] sm:$0xff]  ;;  %v3984_v19 = vld [vmem:[%s3811_s7 + $0x28] sm:$0xff] }
  0xfb   : > { %1006 = vmatpush1.msra.mxu0 %v914_v53  ;;  %v844_v53 = vld [vmem:[#allocation10 + $0x50] sm:$0xff]  ;;  %v3969_v16 = vld [vmem:[%s3811_s7 + $0x40] sm:$0xff] }
  0xfc   : > { %1007 = vmatprep.subr.mxu0 %v909_v54  ;;  %v839_v54 = vld [vmem:[#allocation10 + $0x28] sm:$0xff] }
  0xfd   : > { %1008 = vmatpush1.msra.mxu0 %v908_v55  ;;  %v838_v55 = vld [vmem:[#allocation10 + $0x20] sm:$0xff] }
  0xfe   : > { %1009 = vmatprep.subr.mxu0 %v903_v56  ;;  %v3871_v56 = vld [vmem:[#allocation11 + $0x78] sm:$0xff] }
  0xff   : > { %1010 = vmatpush1.msra.mxu0 %v902_v57  ;;  %v3875_v57 = vld [vmem:[#allocation11 + $0x70] sm:$0xff] }
 0x100   : > { %1011 = vmatprep.subr.mxu0 %v897_v58  ;;  %v3879_v58 = vld [vmem:[#allocation11 + $0x68] sm:$0xff] }
 0x101   : > { %1012 = vmatpush1.msra.mxu0 %v896_v59  ;;  %v3883_v59 = vld [vmem:[#allocation11 + $0x60] sm:$0xff] }
 0x102   : > { %1013 = vmatprep.subr.mxu0 %v891_v60  ;;  %v3887_v60 = vld [vmem:[#allocation11 + $0x58] sm:$0xff] }
 0x103   : > { %1014 = vmatpush1.msra.mxu0 %v890_v61  ;;  %v3891_v61 = vld [vmem:[#allocation11 + $0x50] sm:$0xff] }
 0x104   : > { %1015 = vmatprep.subr.mxu0 %v885_v62  ;;  %v3895_v62 = vld [vmem:[#allocation11 + $0x48] sm:$0xff] }
 0x105   : > { %1016 = vmatpush1.msra.mxu0 %v884_v63  ;;  %v3899_v63 = vld [vmem:[#allocation11 + $0x40] sm:$0xff] }
 0x106   : > { %1017 = vmatprep.subr.mxu0 %v879_v1  ;;  %v3903_v1 = vld [vmem:[#allocation11 + $0x38] sm:$0xff] }
 0x107   : > { %1018 = vmatpush1.msra.mxu0 %v878_v2  ;;  %v3905_v2 = vld [vmem:[#allocation11 + $0x30] sm:$0xff] }
 0x108   : > { %1019 = vmatprep.subr.mxu0 %v873_v3  ;;  %v3909_v3 = vld [vmem:[#allocation11 + $0x28] sm:$0xff] }
 0x109   : > { %1020 = vmatpush1.msra.mxu0 %v872_v4  ;;  %v3913_v4 = vld [vmem:[#allocation11 + $0x20] sm:$0xff] }
 0x10a   : > { %1021 = vmatprep.subr.mxu0 %v867_v5  ;;  %v3917_v5 = vld [vmem:[#allocation11 + $0x18] sm:$0xff] }
 0x10b   : > { %1022 = vmatpush1.msra.mxu0 %v866_v6  ;;  %v3921_v6 = vld [vmem:[#allocation11 + $0x10] sm:$0xff] }
 0x10c   : > { %1023 = vmatprep.subr.mxu0 %v861_v7  ;;  %v3925_v7 = vld [vmem:[#allocation11 + $0x8] sm:$0xff] }
 0x10d   : > { %1024 = vmatpush1.msra.mxu0 %v860_v8  ;;  %v3929_v8 = vld [vmem:[#allocation11] sm:$0xff] }
 0x10e   : > { %1025 = vmatprep.subr.mxu0 %v855_v9  ;;  %v3935_v9 = vld [vmem:[%s3811_s7 + $0x78] sm:$0xff] }
 0x10f   : > { %1026 = vmatpush1.msra.mxu0 %v854_v10  ;;  %v3938_v10 = vld [vmem:[%s3811_s7 + $0x70] sm:$0xff] }
 0x110   : > { %1027 = vmatprep.subr.mxu0 %v849_v11  ;;  %v3944_v11 = vld [vmem:[%s3811_s7 + $0x68] sm:$0xff] }
 0x111   : > { %1028 = vmatpush1.msra.mxu0 %v848_v12  ;;  %v3949_v12 = vld [vmem:[%s3811_s7 + $0x60] sm:$0xff] }
 0x112   : > { %1029 = vmatprep.subr.mxu0 %v843_v13  ;;  %v3954_v13 = vld [vmem:[%s3811_s7 + $0x58] sm:$0xff] }
 0x113   : > { %1030 = vmatpush1.msra.mxu0 %v842_v15  ;;  %v3964_v15 = vld [vmem:[%s3811_s7 + $0x48] sm:$0xff] }
 0x114   : > { %1031 = vmatprep.subr.mxu0 %v837_v17  ;;  %v3974_v17 = vld [vmem:[%s3811_s7 + $0x38] sm:$0xff] }
 0x115   : > { %1032 = vmatpush1.msra.mxu0 %v836_v18  ;;  %v3979_v18 = vld [vmem:[%s3811_s7 + $0x30] sm:$0xff] }
 0x116   : > { %2686 = vmatprep.subr.mxu0 %v4533_v0 }
 0x1b6   : > { %v830_v21 = vpop.f32.mrf.mxu0 }
 0x1b7   : > { %v3860_v22 = vadd.f32 %v2468_v20, %v830_v21  ;;  %v3989_v20 = vld [vmem:[%s3811_s7 + $0x20] sm:$0xff]  ;;  %v723_v21 = vlaneseq }
 0x1b8   : > { %v2685_v24 = vpop.f32.mrf.mxu0 }
 0x1b9   : > { %995 = vmatmul.mubr.f32.vlgmr.msra.gmra.mxu1 %v3860_v22  ;;  %1066 = vmatmul.mubr.f32.vlgmr.msra.gmra.mxu0 %v3860_v22  ;;  %v3995_v24 = vshrl.u32 %v723_v21, 7 }
 0x1ba   : > { %1073 = vmatpush1.msra.mxu1 %v928_v23  ;;  %1136 = vmatprep.mubr.f32.mxu1 %v4533_v0 }
 0x1bb   : > { %1074 = vmatprep.subr.mxu1 %v923_v25  ;;  %2718 = vmatprep.mubr.msk.f32.mxu0 %vm3475_vm0, %v4533_v0 }
 0x1bc   : > { %1075 = vmatpush1.msra.mxu1 %v922_v26  ;;  %2687 = vmatpush3.msra.mxu0 %v3871_v56  ;;  %v729_v26 = vand.u32 7, %v3995_v24 }
 0x1bd   : > { %1076 = vmatprep.subr.mxu1 %v917_v27  ;;  %2688 = vmatprep.subr.mxu0 %v4533_v0 }
 0x1be   : > { %1077 = vmatpush1.msra.mxu1 %v916_v28  ;;  %2689 = vmatpush3.msra.mxu0 %v3875_v57  ;;  %v4514_v28 = vsub.s32 1, %v3995_v24  ;;  %vm4002_vm1 = vcmp.ge.s32.totalorder %v729_v26, 2  ;;  %vm4010_vm2 = vcmp.ge.s32.totalorder %v729_v26, 1 }
 0x1bf   : > { %1078 = vmatprep.subr.mxu1 %v911_v29  ;;  %2690 = vmatprep.subr.mxu0 %v4533_v0 }
 0x1c0   : > { %1079 = vmatpush1.msra.mxu1 %v910_v30  ;;  %2691 = vmatpush3.msra.mxu0 %v3879_v58  ;;  %v1143_v30 = vld [vmem:[%s4581_s29] sm:$0x3]  ;;  %s3354_s29 = sshll.u32 %s3476_s15, 4  ;;  %s3355_s29 = int_to_ptr.vmem [resolvable:$false] %s3354_s29 }
 0x1c1   : > { %1080 = vmatprep.subr.mxu1 %v905_v31  ;;  %2692 = vmatprep.subr.mxu0 %v4533_v0  ;;  %s3356_s4 = scalar_lea.vmem %s3355_s29, 256 }
 0x1c2   : > { %1081 = vmatpush1.msra.mxu1 %v904_v32  ;;  %2693 = vmatpush3.msra.mxu0 %v3883_v59  ;;  %v1158_v32 = vrot.slane %v1143_v30, %v4514_v28  ;;  %v4166_v28 = vld [vmem:[#allocation13 + $0x48] sm:$0xff] }
 0x1c3   : > { %1082 = vmatprep.subr.mxu1 %v899_v33  ;;  %2694 = vmatprep.subr.mxu0 %v4533_v0  ;;  %4599 = vst [vmem:[#allocation43_spill] sm:$0xff] %v4166_v28 }
 0x1c4   : > { %1083 = vmatpush1.msra.mxu1 %v898_v34  ;;  %2695 = vmatpush3.msra.mxu0 %v3887_v60 }
 0x1c5   : > { %1084 = vmatprep.subr.mxu1 %v893_v35  ;;  %2696 = vmatprep.subr.mxu0 %v4533_v0 }
 0x1c6   : > { %1085 = vmatpush1.msra.mxu1 %v892_v36  ;;  %2697 = vmatpush3.msra.mxu0 %v3891_v61 }
 0x1c7   : > { %1086 = vmatprep.subr.mxu1 %v887_v37  ;;  %2698 = vmatprep.subr.mxu0 %v4533_v0 }
 0x1c8   : > { %1087 = vmatpush1.msra.mxu1 %v886_v38  ;;  %2699 = vmatpush3.msra.mxu0 %v3895_v62 }
 0x1c9   : > { %1088 = vmatprep.subr.mxu1 %v881_v39  ;;  %2700 = vmatprep.subr.mxu0 %v4533_v0 }
 0x1ca   : > { %1089 = vmatpush1.msra.mxu1 %v880_v40  ;;  %2701 = vmatpush3.msra.mxu0 %v3899_v63 }
 0x1cb   : > { %1090 = vmatprep.subr.mxu1 %v875_v41  ;;  %2702 = vmatprep.subr.mxu0 %v4533_v0 }
 0x1cc   : > { %1091 = vmatpush1.msra.mxu1 %v874_v42  ;;  %2703 = vmatpush3.msra.mxu0 %v3903_v1 }
 0x1cd   : > { %1092 = vmatprep.subr.mxu1 %v869_v44  ;;  %2704 = vmatprep.subr.mxu0 %v4533_v0 }
 0x1ce   : > { %1093 = vmatpush1.msra.mxu1 %v868_v45  ;;  %2705 = vmatpush3.msra.mxu0 %v3905_v2 }
 0x1cf   : > { %1094 = vmatprep.subr.mxu1 %v863_v46  ;;  %2706 = vmatprep.subr.mxu0 %v4533_v0  ;;  %v4513_v46 = vsub.s32 0, %v3995_v24 }
 0x1d0   : > { %1095 = vmatpush1.msra.mxu1 %v862_v47  ;;  %2707 = vmatpush3.msra.mxu0 %v3909_v3 }
 0x1d1   : > { %1096 = vmatprep.subr.mxu1 %v857_v48  ;;  %2708 = vmatprep.subr.mxu0 %v4533_v0 }
 0x1d2   : > { %1097 = vmatpush1.msra.mxu1 %v856_v49  ;;  %2709 = vmatpush3.msra.mxu0 %v3913_v4  ;;  %v1154_v49 = vrot.slane %v1143_v30, %v4513_v46  ;;  %v4044_v30 = vld [vmem:[%s3811_s7] sm:$0xff]  ;;  %v4162_v46 = vld [vmem:[#allocation13 + $0x50] sm:$0xff] }
 0x1d3   : > { %1098 = vmatprep.subr.mxu1 %v851_v50  ;;  %2710 = vmatprep.subr.mxu0 %v4533_v0  ;;  %4598 = vst [vmem:[#allocation42_spill] sm:$0xff] %v4162_v46 }
 0x1d4   : > { %1099 = vmatpush1.msra.mxu1 %v850_v51  ;;  %2711 = vmatpush3.msra.mxu0 %v3917_v5 }
 0x1d5   : > { %1100 = vmatprep.subr.mxu1 %v845_v52  ;;  %2712 = vmatprep.subr.mxu0 %v4533_v0 }
 0x1d6   : > { %1101 = vmatpush1.msra.mxu1 %v844_v53  ;;  %2713 = vmatpush3.msra.mxu0 %v3921_v6 }
 0x1d7   : > { %1102 = vmatprep.subr.mxu1 %v839_v54  ;;  %2714 = vmatprep.subr.mxu0 %v4533_v0 }
 0x1d8   : > { %1103 = vmatpush1.msra.mxu1 %v838_v55  ;;  %2715 = vmatpush3.msra.mxu0 %v3925_v7 }
 0x1d9   : > { %1137 = vmatmul.mubr.f32.vlgmr.msra.gmra.mxu1 %v3860_v22  ;;  %2721 = vmatprep.subr.mxu1 %v4533_v0 }
 0x1da   : > { %2753 = vmatprep.mubr.msk.f32.mxu1 %vm3475_vm0, %v4533_v0  ;;  %2716 = vmatprep.subr.mxu0 %v4533_v0 }
 0x1db   : > { %2717 = vmatpush3.msra.mxu0 %v3929_v8  ;;  %2722 = vmatpush3.msra.mxu1 %v3935_v9 }
 0x1dc   : > { %2756 = vmatprep.subr.mxu0 %v4533_v0  ;;  %2723 = vmatprep.subr.mxu1 %v4533_v0 }
 0x1dd   : > { %2724 = vmatpush3.msra.mxu1 %v3938_v10 }
 0x1de   : > { %2725 = vmatprep.subr.mxu1 %v4533_v0 }
 0x1df   : > { %2726 = vmatpush3.msra.mxu1 %v3944_v11 }
 0x1e0   : > { %2727 = vmatprep.subr.mxu1 %v4533_v0 }
 0x1e1   : > { %2728 = vmatpush3.msra.mxu1 %v3949_v12 }
 0x1e2   : > { %2729 = vmatprep.subr.mxu1 %v4533_v0 }
 0x1e3   : > { %2730 = vmatpush3.msra.mxu1 %v3954_v13 }
 0x1e4   : > { %2731 = vmatprep.subr.mxu1 %v4533_v0 }
 0x1e5   : > { %2732 = vmatpush3.msra.mxu1 %v3959_v14 }
 0x1e6   : > { %2733 = vmatprep.subr.mxu1 %v4533_v0 }
 0x1e7   : > { %2734 = vmatpush3.msra.mxu1 %v3964_v15 }
 0x1e8   : > { %2735 = vmatprep.subr.mxu1 %v4533_v0 }
 0x1e9   : > { %2736 = vmatpush3.msra.mxu1 %v3969_v16 }
 0x1ea   : > { %2737 = vmatprep.subr.mxu1 %v4533_v0 }
 0x1eb   : > { %2738 = vmatpush3.msra.mxu1 %v3974_v17 }
 0x1ec   : > { %2739 = vmatprep.subr.mxu1 %v4533_v0 }
 0x1ed   : > { %2740 = vmatpush3.msra.mxu1 %v3979_v18 }
 0x1ee   : > { %2741 = vmatprep.subr.mxu1 %v4533_v0 }
 0x1ef   : > { %2742 = vmatpush3.msra.mxu1 %v3984_v19 }
 0x1f0   : > { %2743 = vmatprep.subr.mxu1 %v4533_v0 }
 0x1f1   : > { %2744 = vmatpush3.msra.mxu1 %v3989_v20 }
 0x1f2   : > { %2745 = vmatprep.subr.mxu1 %v4533_v0 }
 0x279   : > { %v996_v23 = vpop.f32.mrf.mxu1  ;;  %v1067_v27 = vpop.f32.mrf.mxu0 }
 0x27a   : > { %v1144_v48 = vrot.slane %v996_v23, 6  ;;  %v1163_v51 = vrot.slane %v1067_v27, 7  ;;  %v4029_v23 = vld [vmem:[%s3811_s7 + $0x18] sm:$0xff]  ;;  %v4034_v27 = vld [vmem:[%s3811_s7 + $0x10] sm:$0xff] }
 0x27b   : > { %v998_v25 = vpop.f32.mrf.mxu1  ;;  %v1069_v33 = vpop.f32.mrf.mxu0  ;;  %2746 = vmatpush3.msra.mxu1 %v4029_v23 }
 0x27c   : > { %v1145_v29 = vrot.slane %v998_v25, 6  ;;  %v1164_v35 = vrot.slane %v1069_v33, 7  ;;  %v1148_v50 = vsel %vm4002_vm1, %v1144_v48, 0.0  ;;  %v1167_v53 = vsel %vm4010_vm2, %v1163_v51, 0.0  ;;  %2747 = vmatprep.subr.mxu1 %v4533_v0  ;;  %v4086_v48 = vld [vmem:[%s3817_s17 + $0x50] sm:$0xff] }
 0x27d   : > { %v1161_v52 = vadd.f32 %v1154_v49, %v1148_v50  ;;  %2748 = vmatpush3.msra.mxu1 %v4034_v27  ;;  %v4091_v49 = vld [vmem:[%s3817_s17 + $0x48] sm:$0xff]  ;;  %v4096_v50 = vld [vmem:[%s3817_s17 + $0x40] sm:$0xff] }
 0x27e   : > { %v1149_v34 = vsel %vm4002_vm1, %v1145_v29, 0.0  ;;  %v1168_v38 = vsel %vm4010_vm2, %v1164_v35, 0.0  ;;  %2749 = vmatprep.subr.mxu1 %v4533_v0  ;;  %v4039_v29 = vld [vmem:[%s3811_s7 + $0x8] sm:$0xff] }
 0x27f   : > { %v1162_v36 = vadd.f32 %v1158_v32, %v1149_v34  ;;  %v1169_v54 = vadd.f32 %v1167_v53, %v1161_v52  ;;  %2750 = vmatpush3.msra.mxu1 %v4039_v29  ;;  %v4051_v32 = vld [vmem:[%s4587_s12] ss:$0 sm:$0xff] }
 0x280   : > { %2751 = vmatprep.subr.mxu1 %v4533_v0  ;;  %4588 = vst [vmem:[#allocation32_spill] sm:$0xff] %v4051_v32 }
 0x281   : > { %v1170_v40 = vadd.f32 %v1168_v38, %v1162_v36  ;;  %2752 = vmatpush3.msra.mxu1 %v4044_v30 }
 0x282   : > { %2791 = vmatprep.subr.mxu1 %v4533_v0 }
 0x299   : > { %v1138_v39 = vpop.f32.mrf.mxu1 }
 0x29a   : > { %v1171_v55 = vadd.f32 %v1169_v54, %v1138_v39  ;;  %v4057_v39 = vand.u32 127, %v723_v21  ;;  %v4071_v21 = vld [vmem:[%s3817_s17 + $0x68] sm:$0xff] }
 0x29b   : > { %v1140_v41 = vpop.f32.mrf.mxu1 }
 0x29c   : > { %v1172_v42 = vadd.f32 %v1170_v40, %v1140_v41  ;;  %4589 = vst [vmem:[#allocation33_spill] sm:$0xff] %v4057_v39  ;;  %vm1322_vm3 = vcmp.lt.s32.totalorder %v4057_v39, 16  ;;  %v4170_v39 = vld [vmem:[#allocation13 + $0x40] sm:$0xff] }
 0x29d   : > { %4600 = vst [vmem:[#allocation44_spill] sm:$0xff] %v4170_v39 }
 0x29e   : > { %v2469_v44 = vmul.f32 -1.442695, %v1172_v42 }
 0x2a0   : > { %3119 = vpow2.f32 %v2469_v44  ;;  %v4063_v44 = vld [vmem:[%s3817_s17 + $0x78] sm:$0xff] }
 0x2ad   : > { %v3120_v45 = vpop.eup %3119 }
 0x2ae   : > { %v1176_v47 = vadd.f32 1.0, %v3120_v45  ;;  %v4076_v45 = vld [vmem:[%s3817_s17 + $0x60] sm:$0xff] }
 0x2b0   : > { %3121 = vrcp.f32 %v1176_v47  ;;  %v4081_v47 = vld [vmem:[%s3817_s17 + $0x58] sm:$0xff] }
 0x2bd   : > { %v3122_v25 = vpop.eup %3121 }
 0x2be   : > { %v4023_v26 = vmul.f32 %v3122_v25, %v1171_v55  ;;  %v4106_v55 = vld [vmem:[%s3817_s17 + $0x38] sm:$0xff]  ;;  %v4109_v25 = vld [vmem:[%s3817_s17 + $0x30] sm:$0xff] }
 0x2c0   : > { %2719 = vmatmul.mubr.f32.vlgmr.msra.gmra.mxu0 %v4023_v26 }
 0x2c1   : > { %2788 = vmatprep.mubr.msk.f32.mxu0 %vm3475_vm0, %v4533_v0  ;;  %2757 = vmatpush3.msra.mxu0 %v4063_v44 }
 0x2c2   : > { %2758 = vmatprep.subr.mxu0 %v4533_v0 }
 0x380   : > { %v1246_v33 = vpop.f32.mrf.mxu0 }
 0x381   : > { %v1247_v34 = vadd.f32 %v4051_v32, %v1246_v33  ;;  %v4114_v33 = vld [vmem:[%s3817_s17 + $0x28] sm:$0xff]  ;;  %v1564_v32 = vld [vmem:[#allocation10 + $0x5a0] sm:$0xff] }
 0x382   : > { %v2720_v35 = vpop.f32.mrf.mxu0 }
 0x383   : > { %v1250_v36 = vadd.f32 %v1247_v34, %v3851_v43  ;;  %v4066_v43 = vld [vmem:[%s3817_s17 + $0x70] sm:$0xff]  ;;  %v4119_v34 = vld [vmem:[%s3817_s17 + $0x20] sm:$0xff]  ;;  %v4124_v35 = vld [vmem:[%s3817_s17 + $0x18] sm:$0xff] }
 0x384   : > { %2759 = vmatpush3.msra.mxu0 %v4066_v43 }
 0x385   : > { %v1251_v38 = vmul.f32 0.70710677, %v1250_v36  ;;  %2760 = vmatprep.subr.mxu0 %v4533_v0  ;;  %v4129_v36 = vld [vmem:[%s3817_s17 + $0x10] sm:$0xff] }
 0x386   : > { %2761 = vmatpush3.msra.mxu0 %v4071_v21  ;;  %4590 = vst [vmem:[#allocation34_spill] sm:$0xff] %v4129_v36 }
 0x387   : > { %2754 = vmatmul.mubr.f32.vlgmr.msra.gmra.mxu1 %v1251_v38  ;;  %2762 = vmatprep.subr.mxu0 %v4533_v0  ;;  %v4134_v38 = vld [vmem:[%s3817_s17 + $0x8] sm:$0xff] }
 0x388   : > { %2823 = vmatprep.mubr.msk.f32.mxu1 %vm3475_vm0, %v4533_v0  ;;  %2763 = vmatpush3.msra.mxu0 %v4076_v45  ;;  %4591 = vst [vmem:[#allocation35_spill] sm:$0xff] %v4134_v38 }
 0x389   : > { %2764 = vmatprep.subr.mxu0 %v4533_v0 }
 0x38a   : > { %2765 = vmatpush3.msra.mxu0 %v4081_v47 }
 0x38b   : > { %2766 = vmatprep.subr.mxu0 %v4533_v0 }
 0x38c   : > { %2767 = vmatpush3.msra.mxu0 %v4086_v48 }
 0x38d   : > { %2768 = vmatprep.subr.mxu0 %v4533_v0 }
 0x38e   : > { %2769 = vmatpush3.msra.mxu0 %v4091_v49 }
 0x38f   : > { %2770 = vmatprep.subr.mxu0 %v4533_v0  ;;  %v4614_v31 = vld [vmem:[#allocation35_spill] sm:$0xff] }
 0x390   : > { %2771 = vmatpush3.msra.mxu0 %v4096_v50 }
 0x391   : > { %2772 = vmatprep.subr.mxu0 %v4533_v0 }
 0x392   : > { %2773 = vmatpush3.msra.mxu0 %v4106_v55 }
 0x393   : > { %2774 = vmatprep.subr.mxu0 %v4533_v0 }
 0x394   : > { %2775 = vmatpush3.msra.mxu0 %v4109_v25 }
 0x395   : > { %2776 = vmatprep.subr.mxu0 %v4533_v0 }
 0x396   : > { %2777 = vmatpush3.msra.mxu0 %v4114_v33 }
 0x397   : > { %2778 = vmatprep.subr.mxu0 %v4533_v0 }
 0x398   : > { %2779 = vmatpush3.msra.mxu0 %v4119_v34 }
 0x399   : > { %2780 = vmatprep.subr.mxu0 %v4533_v0 }
 0x39a   : > { %2781 = vmatpush3.msra.mxu0 %v4124_v35 }
 0x39b   : > { %2782 = vmatprep.subr.mxu0 %v4533_v0 }
 0x39c   : > { %2783 = vmatpush3.msra.mxu0 %v4129_v36  ;;  %v4609_v36 = vmov 0.0  }
 0x39d   : > { %2784 = vmatprep.subr.mxu0 %v4533_v0 }
 0x39e   : > { %2785 = vmatpush3.msra.mxu0 %v4134_v38  ;;  %v1540_v38 = vld [vmem:[#allocation10 + $0x4e0] sm:$0xff] }
 0x39f   : > { %2786 = vmatprep.subr.mxu0 %v4533_v0 }
 0x447   : > { %v1318_v40 = vpop.f32.mrf.mxu1 }
 0x448   : > { %v1325_v41 = vsel %vm1322_vm3, %v1318_v40, -1e+30  ;;  %v4139_v40 = vld [vmem:[%s3817_s17] sm:$0xff]  ;;  %s4635_s17 = sld [smem:[#allocation62_spill]] }
 0x449   : > { %1326 = vmax.xlane.f32.xlu0 %v1325_v41  ;;  %v2755_v42 = vpop.f32.mrf.mxu1  ;;  %4592 = vst [vmem:[#allocation36_spill] sm:$0xff] %v4139_v40  ;;  %2787 = vmatpush3.msra.mxu0 %v4139_v40  ;;  %v1559_v40 = vld [vmem:[#allocation10 + $0x578] sm:$0xff] }
 0x44a   : > { %v4146_v42 = vld [vmem:[#allocation13 + $0x70] sm:$0xff] }
 0x44b   : > { %4594 = vst [vmem:[#allocation38_spill] sm:$0xff] %v4146_v42 }
 0x44e   : > { %s2244_s22 = scalar_lea.hbm %s4635_s17, %s2475_s27 }
 0x450   : > { %v4615_v37 = vld [vmem:[#allocation36_spill] sm:$0xff] }
 0x4d2   : > { %v1327_v51 = vpop.xlane.xlu0 %1326 }
 0x4d3   : > { %v1328_v52 = vsub.f32 %v1325_v41, %v1327_v51  ;;  %v4144_v41 = vld [vmem:[#allocation13 + $0x78] sm:$0xff]  ;;  %v4150_v51 = vld [vmem:[#allocation13 + $0x68] sm:$0xff] }
 0x4d4   : > { %4593 = vst [vmem:[#allocation37_spill] sm:$0xff] %v4144_v41  ;;  %2792 = vmatpush3.msra.mxu1 %v4144_v41  ;;  %4595 = vst [vmem:[#allocation39_spill] sm:$0xff] %v4150_v51  ;;  %v1573_v41 = vld [vmem:[#allocation10 + $0x5e8] sm:$0xff] }
 0x4d5   : > { %v1329_v53 = vmul.f32 1.442695, %v1328_v52  ;;  %2793 = vmatprep.subr.mxu1 %v4533_v0  ;;  %v4154_v52 = vld [vmem:[#allocation13 + $0x60] sm:$0xff] }
 0x4d6   : > { %2794 = vmatpush3.msra.mxu1 %v4146_v42  ;;  %4596 = vst [vmem:[#allocation40_spill] sm:$0xff] %v4154_v52  ;;  %v1571_v42 = vld [vmem:[#allocation10 + $0x5d8] sm:$0xff] }
 0x4d7   : > { %3123 = vpow2.f32 %v1329_v53  ;;  %2795 = vmatprep.subr.mxu1 %v4533_v0  ;;  %v4158_v53 = vld [vmem:[#allocation13 + $0x58] sm:$0xff]  ;;  %1576 = vmatprep.subr.mxu0 %v1571_v42  ;;  %v1534_v42 = vld [vmem:[#allocation10 + $0x4b0] sm:$0xff] }
 0x4d8   : > { %2796 = vmatpush3.msra.mxu1 %v4150_v51  ;;  %4597 = vst [vmem:[#allocation41_spill] sm:$0xff] %v4158_v53 }
 0x4d9   : > { %2797 = vmatprep.subr.mxu1 %v4533_v0 }
 0x4da   : > { %2798 = vmatpush3.msra.mxu1 %v4154_v52  ;;  %v4174_v52 = vld [vmem:[#allocation13 + $0x38] sm:$0xff] }
 0x4db   : > { %2799 = vmatprep.subr.mxu1 %v4533_v0  ;;  %4601 = vst [vmem:[#allocation45_spill] sm:$0xff] %v4174_v52 }
 0x4dc   : > { %2800 = vmatpush3.msra.mxu1 %v4158_v53  ;;  %v4178_v53 = vld [vmem:[#allocation13 + $0x30] sm:$0xff] }
 0x4dd   : > { %2801 = vmatprep.subr.mxu1 %v4533_v0  ;;  %4602 = vst [vmem:[#allocation46_spill] sm:$0xff] %v4178_v53 }
 0x4de   : > { %2802 = vmatpush3.msra.mxu1 %v4162_v46  ;;  %v4182_v46 = vld [vmem:[#allocation13 + $0x28] sm:$0xff] }
 0x4df   : > { %2803 = vmatprep.subr.mxu1 %v4533_v0  ;;  %4603 = vst [vmem:[#allocation47_spill] sm:$0xff] %v4182_v46 }
 0x4e0   : > { %2804 = vmatpush3.msra.mxu1 %v4166_v28  ;;  %v4186_v28 = vld [vmem:[#allocation13 + $0x20] sm:$0xff] }
 0x4e1   : > { %2805 = vmatprep.subr.mxu1 %v4533_v0  ;;  %4604 = vst [vmem:[#allocation48_spill] sm:$0xff] %v4186_v28 }
 0x4e2   : > { %2806 = vmatpush3.msra.mxu1 %v4170_v39  ;;  %v4190_v39 = vld [vmem:[#allocation13 + $0x18] sm:$0xff] }
 0x4e3   : > { %2807 = vmatprep.subr.mxu1 %v4533_v0  ;;  %4605 = vst [vmem:[#allocation49_spill] sm:$0xff] %v4190_v39 }
 0x4e4   : > { %v4102_v54 = vpop.eup %3123  ;;  %2808 = vmatpush3.msra.mxu1 %v4174_v52  ;;  %v4194_v52 = vld [vmem:[#allocation13 + $0x10] sm:$0xff] }
 0x4e5   : > { %1331 = vadd.xlane.f32.xlu0 %v4102_v54  ;;  %2809 = vmatprep.subr.mxu1 %v4533_v0  ;;  %4606 = vst [vmem:[#allocation50_spill] sm:$0xff] %v4194_v52 }
 0x4e6   : > { %2810 = vmatpush3.msra.mxu1 %v4178_v53  ;;  %v4198_v53 = vld [vmem:[#allocation13 + $0x8] sm:$0xff] }
 0x4e7   : > { %2811 = vmatprep.subr.mxu1 %v4533_v0  ;;  %4607 = vst [vmem:[#allocation51_spill] sm:$0xff] %v4198_v53 }
 0x4e8   : > { %2812 = vmatpush3.msra.mxu1 %v4182_v46 }
 0x4e9   : > { %2813 = vmatprep.subr.mxu1 %v4533_v0 }
 0x4ea   : > { %2814 = vmatpush3.msra.mxu1 %v4186_v28 }
 0x4eb   : > { %2815 = vmatprep.subr.mxu1 %v4533_v0 }
 0x4ec   : > { %2816 = vmatpush3.msra.mxu1 %v4190_v39  ;;  %v4206_v39 = vld [vmem:[#allocation13] sm:$0xff] }
 0x4ed   : > { %2817 = vmatprep.subr.mxu1 %v4533_v0  ;;  %4608 = vst [vmem:[#allocation52_spill] sm:$0xff] %v4206_v39 }
 0x4ee   : > { %2818 = vmatpush3.msra.mxu1 %v4194_v52  ;;  %v1570_v52 = vld [vmem:[#allocation10 + $0x5d0] sm:$0xff] }
 0x4ef   : > { %2819 = vmatprep.subr.mxu1 %v4533_v0 }
 0x4f0   : > { %2820 = vmatpush3.msra.mxu1 %v4198_v53  ;;  %v1565_v53 = vld [vmem:[#allocation10 + $0x5a8] sm:$0xff] }
 0x4f1   : > { %2821 = vmatprep.subr.mxu1 %v4533_v0 }
 0x4f2   : > { %2822 = vmatpush3.msra.mxu1 %v4206_v39  ;;  %v1541_v39 = vld [vmem:[#allocation10 + $0x4e8] sm:$0xff] }
 0x4f3   : > { %1647 = vmatprep.subr.mxu1 %v1573_v41  ;;  %v1535_v41 = vld [vmem:[#allocation10 + $0x4b8] sm:$0xff] }
 0x56e   : > { %v1332_v46 = vpop.xlane.xlu0 %1331 }
 0x56f   : > { %3125 = vrcp.f32 %v1332_v46  ;;  %v1558_v46 = vld [vmem:[#allocation10 + $0x570] sm:$0xff] }
 0x57c   : > { %v3126_v28 = vpop.eup %3125 }
 0x57d   : > { %v1334_v51 = vmul.f32 %v3126_v28, %v4102_v54  ;;  %v1553_v28 = vld [vmem:[#allocation10 + $0x548] sm:$0xff]  ;;  %v1552_v54 = vld [vmem:[#allocation10 + $0x540] sm:$0xff] }
 0x57f   : > { %2789 = vmatmul.mubr.f32.vlgmr.msra.gmra.mxu0 %v1334_v51  ;;  %v1547_v51 = vld [vmem:[#allocation10 + $0x518] sm:$0xff] }
 0x580   : > { %1640 = vmatprep.mubr.f32.mxu0 %v4533_v0  ;;  %1577 = vmatpush1.msra.mxu0 %v1570_v52  ;;  %v1546_v0 = vld [vmem:[#allocation10 + $0x510] sm:$0xff]  ;;  %v1529_v52 = vld [vmem:[#allocation10 + $0x488] sm:$0xff] }
 0x581   : > { %1578 = vmatprep.subr.mxu0 %v1565_v53  ;;  %v1528_v53 = vld [vmem:[#allocation10 + $0x480] sm:$0xff] }
 0x582   : > { %1579 = vmatpush1.msra.mxu0 %v1564_v32  ;;  %v1523_v32 = vld [vmem:[#allocation10 + $0x458] sm:$0xff] }
 0x583   : > { %1580 = vmatprep.subr.mxu0 %v1559_v40  ;;  %v1522_v40 = vld [vmem:[#allocation10 + $0x450] sm:$0xff] }
 0x584   : > { %1581 = vmatpush1.msra.mxu0 %v1558_v46  ;;  %v1517_v46 = vld [vmem:[#allocation10 + $0x428] sm:$0xff] }
 0x585   : > { %1582 = vmatprep.subr.mxu0 %v1553_v28  ;;  %v1516_v28 = vld [vmem:[#allocation10 + $0x420] sm:$0xff] }
 0x586   : > { %1583 = vmatpush1.msra.mxu0 %v1552_v54  ;;  %v1511_v54 = vld [vmem:[#allocation10 + $0x3f8] sm:$0xff] }
 0x587   : > { %1584 = vmatprep.subr.mxu0 %v1547_v51  ;;  %v1510_v51 = vld [vmem:[#allocation10 + $0x3f0] sm:$0xff] }
 0x588   : > { %1585 = vmatpush1.msra.mxu0 %v1546_v0  ;;  %v1572_v0 = vld [vmem:[#allocation10 + $0x5e0] sm:$0xff] }
 0x589   : > { %1586 = vmatprep.subr.mxu0 %v1541_v39 }
 0x58a   : > { %1587 = vmatpush1.msra.mxu0 %v1540_v38  ;;  %v1567_v38 = vld [vmem:[#allocation10 + $0x5b8] sm:$0xff] }
 0x58b   : > { %1588 = vmatprep.subr.mxu0 %v1535_v41  ;;  %v1566_v41 = vld [vmem:[#allocation10 + $0x5b0] sm:$0xff] }
 0x58c   : > { %1589 = vmatpush1.msra.mxu0 %v1534_v42 }
 0x58d   : > { %1590 = vmatprep.subr.mxu0 %v1529_v52  ;;  %v1561_v52 = vld [vmem:[#allocation10 + $0x588] sm:$0xff] }
 0x58e   : > { %1591 = vmatpush1.msra.mxu0 %v1528_v53  ;;  %v1560_v53 = vld [vmem:[#allocation10 + $0x580] sm:$0xff] }
 0x58f   : > { %1592 = vmatprep.subr.mxu0 %v1523_v32  ;;  %v1555_v32 = vld [vmem:[#allocation10 + $0x558] sm:$0xff] }
 0x590   : > { %1593 = vmatpush1.msra.mxu0 %v1522_v40  ;;  %v1554_v40 = vld [vmem:[#allocation10 + $0x550] sm:$0xff] }
 0x591   : > { %1594 = vmatprep.subr.mxu0 %v1517_v46  ;;  %v1549_v46 = vld [vmem:[#allocation10 + $0x528] sm:$0xff] }
 0x592   : > { %1595 = vmatpush1.msra.mxu0 %v1516_v28  ;;  %v1548_v28 = vld [vmem:[#allocation10 + $0x520] sm:$0xff] }
 0x593   : > { %1596 = vmatprep.subr.mxu0 %v1511_v54  ;;  %v1543_v54 = vld [vmem:[#allocation10 + $0x4f8] sm:$0xff] }
 0x594   : > { %1597 = vmatpush1.msra.mxu0 %v1510_v51  ;;  %v1542_v51 = vld [vmem:[#allocation10 + $0x4f0] sm:$0xff] }
 0x63f   : > { %v1401_v39 = vpop.f32.mrf.mxu0 }
 0x640   : > { %2824 = vmatmul.mubr.f32.vlgmr.msra.gmra.mxu1 %v1401_v39  ;;  %v1537_v39 = vld [vmem:[#allocation10 + $0x4c8] sm:$0xff] }
 0x641   : > { %v2790_v42 = vpop.f32.mrf.mxu0  ;;  %1648 = vmatpush1.msra.mxu1 %v1572_v0  ;;  %1711 = vmatprep.mubr.f32.mxu1 %v4609_v36  ;;  %v1536_v0 = vld [vmem:[#allocation10 + $0x4c0] sm:$0xff] }
 0x642   : > { %1649 = vmatprep.subr.mxu1 %v1567_v38  ;;  %v1531_v42 = vld [vmem:[#allocation10 + $0x498] sm:$0xff]  ;;  %v1530_v38 = vld [vmem:[#allocation10 + $0x490] sm:$0xff] }
 0x643   : > { %1650 = vmatpush1.msra.mxu1 %v1566_v41  ;;  %v1525_v41 = vld [vmem:[#allocation10 + $0x468] sm:$0xff] }
 0x644   : > { %1651 = vmatprep.subr.mxu1 %v1561_v52  ;;  %v1524_v52 = vld [vmem:[#allocation10 + $0x460] sm:$0xff] }
 0x645   : > { %1652 = vmatpush1.msra.mxu1 %v1560_v53  ;;  %v1519_v53 = vld [vmem:[#allocation10 + $0x438] sm:$0xff] }
 0x646   : > { %1653 = vmatprep.subr.mxu1 %v1555_v32  ;;  %v1518_v32 = vld [vmem:[#allocation10 + $0x430] sm:$0xff] }
 0x647   : > { %1654 = vmatpush1.msra.mxu1 %v1554_v40  ;;  %v1513_v40 = vld [vmem:[#allocation10 + $0x408] sm:$0xff] }
 0x648   : > { %1655 = vmatprep.subr.mxu1 %v1549_v46  ;;  %v1505_v46 = vld [vmem:[#allocation10 + $0x3c8] sm:$0xff] }
 0x649   : > { %1656 = vmatpush1.msra.mxu1 %v1548_v28  ;;  %v1512_v28 = vld [vmem:[#allocation10 + $0x400] sm:$0xff]  ;;  %1598 = vmatprep.subr.mxu0 %v1505_v46  ;;  %v1494_v46 = vld [vmem:[#allocation10 + $0x370] sm:$0xff] }
 0x64a   : > { %1657 = vmatprep.subr.mxu1 %v1543_v54  ;;  %v1504_v54 = vld [vmem:[#allocation10 + $0x3c0] sm:$0xff] }
 0x64b   : > { %1658 = vmatpush1.msra.mxu1 %v1542_v51  ;;  %v1507_v51 = vld [vmem:[#allocation10 + $0x3d8] sm:$0xff]  ;;  %1599 = vmatpush1.msra.mxu0 %v1504_v54  ;;  %v1489_v54 = vld [vmem:[#allocation10 + $0x348] sm:$0xff] }
 0x64c   : > { %1659 = vmatprep.subr.mxu1 %v1537_v39  ;;  %v1499_v39 = vld [vmem:[#allocation10 + $0x398] sm:$0xff] }
 0x64d   : > { %1660 = vmatpush1.msra.mxu1 %v1536_v0  ;;  %v1506_v0 = vld [vmem:[#allocation10 + $0x3d0] sm:$0xff]  ;;  %1600 = vmatprep.subr.mxu0 %v1499_v39  ;;  %v1488_v39 = vld [vmem:[#allocation10 + $0x340] sm:$0xff] }
 0x64e   : > { %1661 = vmatprep.subr.mxu1 %v1531_v42  ;;  %v1498_v42 = vld [vmem:[#allocation10 + $0x390] sm:$0xff] }
 0x64f   : > { %1662 = vmatpush1.msra.mxu1 %v1530_v38  ;;  %v1501_v38 = vld [vmem:[#allocation10 + $0x3a8] sm:$0xff]  ;;  %1601 = vmatpush1.msra.mxu0 %v1498_v42  ;;  %v1483_v42 = vld [vmem:[#allocation10 + $0x318] sm:$0xff] }
 0x650   : > { %1663 = vmatprep.subr.mxu1 %v1525_v41  ;;  %v1493_v41 = vld [vmem:[#allocation10 + $0x368] sm:$0xff] }
 0x651   : > { %1664 = vmatpush1.msra.mxu1 %v1524_v52  ;;  %v1500_v52 = vld [vmem:[#allocation10 + $0x3a0] sm:$0xff]  ;;  %1602 = vmatprep.subr.mxu0 %v1493_v41  ;;  %v1575_v41 = vld [vmem:[#allocation10 + $0x5f8] sm:$0xff] }
 0x652   : > { %1665 = vmatprep.subr.mxu1 %v1519_v53  ;;  %v1492_v53 = vld [vmem:[#allocation10 + $0x360] sm:$0xff] }
 0x653   : > { %1666 = vmatpush1.msra.mxu1 %v1518_v32  ;;  %v1495_v32 = vld [vmem:[#allocation10 + $0x378] sm:$0xff]  ;;  %1603 = vmatpush1.msra.mxu0 %v1492_v53 }
 0x654   : > { %1667 = vmatprep.subr.mxu1 %v1513_v40  ;;  %v1487_v40 = vld [vmem:[#allocation10 + $0x338] sm:$0xff] }
 0x655   : > { %1668 = vmatpush1.msra.mxu1 %v1512_v28  ;;  %1604 = vmatprep.subr.mxu0 %v1487_v40  ;;  %v1486_v28 = vld [vmem:[#allocation10 + $0x330] sm:$0xff] }
 0x656   : > { %1669 = vmatprep.subr.mxu1 %v1507_v51  ;;  %1605 = vmatpush1.msra.mxu0 %v1486_v28  ;;  %v1481_v51 = vld [vmem:[#allocation10 + $0x308] sm:$0xff] }
 0x657   : > { %1670 = vmatpush1.msra.mxu1 %v1506_v0  ;;  %1606 = vmatprep.subr.mxu0 %v1481_v51  ;;  %v1480_v0 = vld [vmem:[#allocation10 + $0x300] sm:$0xff] }
 0x658   : > { %1671 = vmatprep.subr.mxu1 %v1501_v38  ;;  %1607 = vmatpush1.msra.mxu0 %v1480_v0  ;;  %v1482_v38 = vld [vmem:[#allocation10 + $0x310] sm:$0xff]  ;;  %v1569_v0 = vld [vmem:[#allocation10 + $0x5c8] sm:$0xff] }
 0x659   : > { %1672 = vmatpush1.msra.mxu1 %v1500_v52  ;;  %1718 = vmatprep.subr.mxu0 %v1575_v41  ;;  %v4214_v52 = vld [vmem:[%s4610_s8] ss:$0 sm:$0xff] }
 0x65a   : > { %1673 = vmatprep.subr.mxu1 %v1495_v32  ;;  %v1562_v41 = vld [vmem:[#allocation10 + $0x590] sm:$0xff] }
 0x65b   : > { %1674 = vmatpush1.msra.mxu1 %v1494_v46 }
 0x65c   : > { %1675 = vmatprep.subr.mxu1 %v1489_v54 }
 0x65d   : > { %1676 = vmatpush1.msra.mxu1 %v1488_v39  ;;  %v1574_v39 = vld [vmem:[#allocation10 + $0x5f0] sm:$0xff] }
 0x65e   : > { %1677 = vmatprep.subr.mxu1 %v1483_v42  ;;  %v1568_v42 = vld [vmem:[#allocation10 + $0x5c0] sm:$0xff] }
 0x65f   : > { %1678 = vmatpush1.msra.mxu1 %v1482_v38  ;;  %v1563_v38 = vld [vmem:[#allocation10 + $0x598] sm:$0xff] }
 0x660   : > { %2826 = vmatprep.subr.mxu1 %v4609_v36 }
 0x700   : > { %v1471_v53 = vpop.f32.mrf.mxu1 }
 0x701   : > { %v1472_v32 = vadd.f32 %v4214_v52, %v1471_v53  ;;  %v1551_v53 = vld [vmem:[#allocation10 + $0x538] sm:$0xff] }
 0x702   : > { %v2825_v40 = vpop.f32.mrf.mxu1 }
 0x703   : > { %v1475_v46 = vadd.f32 %v1472_v32, %v4023_v26  ;;  %v1557_v26 = vld [vmem:[#allocation10 + $0x568] sm:$0xff]  ;;  %v1550_v32 = vld [vmem:[#allocation10 + $0x530] sm:$0xff] }
 0x704   : > { %v1545_v40 = vld [vmem:[#allocation10 + $0x508] sm:$0xff] }
 0x705   : > { %v1476_v28 = vmul.f32 0.70710677, %v1475_v46  ;;  %v1539_v46 = vld [vmem:[#allocation10 + $0x4d8] sm:$0xff] }
 0x707   : > { %v1477_v54 = vadd.f32 %v1476_v28, %v3860_v22  ;;  %v1556_v22 = vld [vmem:[#allocation10 + $0x560] sm:$0xff]  ;;  %v1533_v28 = vld [vmem:[#allocation10 + $0x4a8] sm:$0xff] }
 0x709   : > { %v4219_v51 = vmul.f32 0.70710677, %v1477_v54  ;;  %v1527_v54 = vld [vmem:[#allocation10 + $0x478] sm:$0xff] }
 0x70b   : > { %1641 = vmatmul.mubr.f32.vlgmr.msra.gmra.mxu0 %v4219_v51  ;;  %1712 = vmatmul.mubr.f32.vlgmr.msra.gmra.mxu1 %v4219_v51 }
 0x70c   : > { %1719 = vmatpush1.msra.mxu0 %v1574_v39  ;;  %1782 = vmatprep.mubr.f32.mxu0 %v4609_v36  ;;  %v1521_v39 = vld [vmem:[#allocation10 + $0x448] sm:$0xff] }
 0x70d   : > { %1720 = vmatprep.subr.mxu0 %v1569_v0  ;;  %2827 = vmatpush3.msra.mxu1 %v3871_v56  ;;  %v1544_v56 = vld [vmem:[#allocation10 + $0x500] sm:$0xff]  ;;  %v1515_v0 = vld [vmem:[#allocation10 + $0x418] sm:$0xff] }
 0x70e   : > { %1721 = vmatpush1.msra.mxu0 %v1568_v42  ;;  %2828 = vmatprep.subr.mxu1 %v4609_v36  ;;  %v1509_v42 = vld [vmem:[#allocation10 + $0x3e8] sm:$0xff] }
 0x70f   : > { %1722 = vmatprep.subr.mxu0 %v1563_v38  ;;  %2829 = vmatpush3.msra.mxu1 %v3875_v57  ;;  %v1538_v57 = vld [vmem:[#allocation10 + $0x4d0] sm:$0xff]  ;;  %v1503_v38 = vld [vmem:[#allocation10 + $0x3b8] sm:$0xff] }
 0x710   : > { %1723 = vmatpush1.msra.mxu0 %v1562_v41  ;;  %2830 = vmatprep.subr.mxu1 %v4609_v36  ;;  %v1497_v41 = vld [vmem:[#allocation10 + $0x388] sm:$0xff] }
 0x711   : > { %1724 = vmatprep.subr.mxu0 %v1557_v26  ;;  %2831 = vmatpush3.msra.mxu1 %v3879_v58  ;;  %v1532_v58 = vld [vmem:[#allocation10 + $0x4a0] sm:$0xff]  ;;  %v1491_v26 = vld [vmem:[#allocation10 + $0x358] sm:$0xff] }
 0x712   : > { %1725 = vmatpush1.msra.mxu0 %v1556_v22  ;;  %2832 = vmatprep.subr.mxu1 %v4609_v36  ;;  %v1485_v22 = vld [vmem:[#allocation10 + $0x328] sm:$0xff] }
 0x713   : > { %1726 = vmatprep.subr.mxu0 %v1551_v53  ;;  %2833 = vmatpush3.msra.mxu1 %v3883_v59  ;;  %v1526_v59 = vld [vmem:[#allocation10 + $0x470] sm:$0xff] }
 0x714   : > { %1727 = vmatpush1.msra.mxu0 %v1550_v32  ;;  %2834 = vmatprep.subr.mxu1 %v4609_v36 }
 0x715   : > { %1728 = vmatprep.subr.mxu0 %v1545_v40  ;;  %2835 = vmatpush3.msra.mxu1 %v3887_v60  ;;  %v1520_v60 = vld [vmem:[#allocation10 + $0x440] sm:$0xff] }
 0x716   : > { %1729 = vmatpush1.msra.mxu0 %v1544_v56  ;;  %2836 = vmatprep.subr.mxu1 %v4609_v36 }
 0x717   : > { %1730 = vmatprep.subr.mxu0 %v1539_v46  ;;  %2837 = vmatpush3.msra.mxu1 %v3891_v61  ;;  %v1514_v61 = vld [vmem:[#allocation10 + $0x410] sm:$0xff] }
 0x718   : > { %1731 = vmatpush1.msra.mxu0 %v1538_v57  ;;  %2838 = vmatprep.subr.mxu1 %v4609_v36 }
 0x719   : > { %1732 = vmatprep.subr.mxu0 %v1533_v28  ;;  %2839 = vmatpush3.msra.mxu1 %v3895_v62  ;;  %v1508_v62 = vld [vmem:[#allocation10 + $0x3e0] sm:$0xff] }
 0x71a   : > { %1733 = vmatpush1.msra.mxu0 %v1532_v58  ;;  %2840 = vmatprep.subr.mxu1 %v4609_v36 }
 0x71b   : > { %1734 = vmatprep.subr.mxu0 %v1527_v54  ;;  %2841 = vmatpush3.msra.mxu1 %v3899_v63  ;;  %v1502_v63 = vld [vmem:[#allocation10 + $0x3b0] sm:$0xff] }
 0x71c   : > { %1735 = vmatpush1.msra.mxu0 %v1526_v59  ;;  %2842 = vmatprep.subr.mxu1 %v4609_v36  ;;  %v4623_v59 = vld [vmem:[#allocation43_spill] sm:$0xff] }
 0x71d   : > { %1736 = vmatprep.subr.mxu0 %v1521_v39  ;;  %2843 = vmatpush3.msra.mxu1 %v3903_v1  ;;  %v1496_v1 = vld [vmem:[#allocation10 + $0x380] sm:$0xff] }
 0x71e   : > { %1737 = vmatpush1.msra.mxu0 %v1520_v60  ;;  %2844 = vmatprep.subr.mxu1 %v4609_v36  ;;  %v4624_v39 = vld [vmem:[#allocation44_spill] sm:$0xff]  ;;  %v4625_v60 = vld [vmem:[#allocation45_spill] sm:$0xff] }
 0x71f   : > { %1738 = vmatprep.subr.mxu0 %v1515_v0  ;;  %2845 = vmatpush3.msra.mxu1 %v3905_v2  ;;  %v1490_v2 = vld [vmem:[#allocation10 + $0x350] sm:$0xff] }
 0x720   : > { %1739 = vmatpush1.msra.mxu0 %v1514_v61  ;;  %2846 = vmatprep.subr.mxu1 %v4609_v36  ;;  %v4626_v0 = vld [vmem:[#allocation46_spill] sm:$0xff]  ;;  %v4627_v61 = vld [vmem:[#allocation47_spill] sm:$0xff] }
 0x721   : > { %1740 = vmatprep.subr.mxu0 %v1509_v42  ;;  %2847 = vmatpush3.msra.mxu1 %v3909_v3  ;;  %v1484_v3 = vld [vmem:[#allocation10 + $0x320] sm:$0xff] }
 0x722   : > { %1741 = vmatpush1.msra.mxu0 %v1508_v62  ;;  %2848 = vmatprep.subr.mxu1 %v4609_v36  ;;  %v4628_v42 = vld [vmem:[#allocation48_spill] sm:$0xff]  ;;  %v4629_v62 = vld [vmem:[#allocation49_spill] sm:$0xff] }
 0x723   : > { %1742 = vmatprep.subr.mxu0 %v1503_v38  ;;  %2849 = vmatpush3.msra.mxu1 %v3913_v4  ;;  %v4630_v38 = vld [vmem:[#allocation50_spill] sm:$0xff] }
 0x724   : > { %1743 = vmatpush1.msra.mxu0 %v1502_v63  ;;  %2850 = vmatprep.subr.mxu1 %v4609_v36  ;;  %v4631_v63 = vld [vmem:[#allocation51_spill] sm:$0xff] }
 0x725   : > { %1744 = vmatprep.subr.mxu0 %v1497_v41  ;;  %2851 = vmatpush3.msra.mxu1 %v3917_v5  ;;  %v4632_v41 = vld [vmem:[#allocation52_spill] sm:$0xff] }
 0x726   : > { %1745 = vmatpush1.msra.mxu0 %v1496_v1  ;;  %2852 = vmatprep.subr.mxu1 %v4609_v36 }
 0x727   : > { %1746 = vmatprep.subr.mxu0 %v1491_v26  ;;  %2853 = vmatpush3.msra.mxu1 %v3921_v6 }
 0x728   : > { %1747 = vmatpush1.msra.mxu0 %v1490_v2  ;;  %2854 = vmatprep.subr.mxu1 %v4609_v36 }
 0x729   : > { %1748 = vmatprep.subr.mxu0 %v1485_v22  ;;  %2855 = vmatpush3.msra.mxu1 %v3925_v7 }
 0x72a   : > { %1749 = vmatpush1.msra.mxu0 %v1484_v3  ;;  %2856 = vmatprep.subr.mxu1 %v4609_v36 }
 0x72b   : > { %1783 = vmatmul.mubr.f32.vlgmr.msra.gmra.mxu0 %v4219_v51  ;;  %2857 = vmatpush3.msra.mxu1 %v3929_v8  ;;  %v2470_v8 = vld [vmem:[%s4582_s1 + $0x2] sm:$0x3] }
 0x72c   : > { %2858 = vmatprep.mubr.msk.f32.mxu1 %vm3475_vm0, %v4609_v36  ;;  %2861 = vmatprep.subr.mxu0 %v4609_v36 }
 0x72d   : > { %2862 = vmatpush3.msra.mxu0 %v3935_v9  ;;  %2893 = vmatprep.mubr.msk.f32.mxu0 %vm3475_vm0, %v4609_v36  ;;  %v4611_v9 = vsub.s32 1, %v3995_v24 }
 0x72e   : > { %2863 = vmatprep.subr.mxu0 %v4609_v36  ;;  %2896 = vmatprep.subr.mxu1 %v4609_v36 }
 0x72f   : > { %2864 = vmatpush3.msra.mxu0 %v3938_v10  ;;  %v1803_v10 = vrot.slane %v2470_v8, %v4611_v9 }
 0x730   : > { %2865 = vmatprep.subr.mxu0 %v4609_v36 }
 0x731   : > { %2866 = vmatpush3.msra.mxu0 %v3944_v11 }
 0x732   : > { %2867 = vmatprep.subr.mxu0 %v4609_v36 }
 0x733   : > { %2868 = vmatpush3.msra.mxu0 %v3949_v12 }
 0x734   : > { %2869 = vmatprep.subr.mxu0 %v4609_v36 }
 0x735   : > { %2870 = vmatpush3.msra.mxu0 %v3954_v13 }
 0x736   : > { %2871 = vmatprep.subr.mxu0 %v4609_v36 }
 0x737   : > { %2872 = vmatpush3.msra.mxu0 %v3959_v14 }
 0x738   : > { %2873 = vmatprep.subr.mxu0 %v4609_v36 }
 0x739   : > { %2874 = vmatpush3.msra.mxu0 %v3964_v15 }
 0x73a   : > { %2875 = vmatprep.subr.mxu0 %v4609_v36 }
 0x73b   : > { %2876 = vmatpush3.msra.mxu0 %v3969_v16 }
 0x73c   : > { %2877 = vmatprep.subr.mxu0 %v4609_v36 }
 0x73d   : > { %2878 = vmatpush3.msra.mxu0 %v3974_v17 }
 0x73e   : > { %2879 = vmatprep.subr.mxu0 %v4609_v36 }
 0x73f   : > { %2880 = vmatpush3.msra.mxu0 %v3979_v18 }
 0x740   : > { %2881 = vmatprep.subr.mxu0 %v4609_v36 }
 0x741   : > { %2882 = vmatpush3.msra.mxu0 %v3984_v19 }
 0x742   : > { %2883 = vmatprep.subr.mxu0 %v4609_v36 }
 0x743   : > { %2884 = vmatpush3.msra.mxu0 %v3989_v20 }
 0x744   : > { %2885 = vmatprep.subr.mxu0 %v4609_v36 }
 0x745   : > { %2886 = vmatpush3.msra.mxu0 %v4029_v23 }
 0x746   : > { %2887 = vmatprep.subr.mxu0 %v4609_v36 }
 0x747   : > { %2888 = vmatpush3.msra.mxu0 %v4034_v27 }
 0x748   : > { %2889 = vmatprep.subr.mxu0 %v4609_v36 }
 0x749   : > { %2890 = vmatpush3.msra.mxu0 %v4039_v29 }
 0x74a   : > { %2891 = vmatprep.subr.mxu0 %v4609_v36 }
 0x74b   : > { %2892 = vmatpush3.msra.mxu0 %v4044_v30  ;;  %v4612_v30 = vsub.s32 0, %v3995_v24  ;;  %v4613_v24 = vld [vmem:[#allocation34_spill] sm:$0xff] }
 0x74c   : > { %2931 = vmatprep.subr.mxu0 %v4609_v36 }
 0x74d   : > { %v1799_v53 = vrot.slane %v2470_v8, %v4612_v30  ;;  %v2122_v30 = vld [vmem:[#allocation14 + $0x18] sm:$0xff] }
 0x7cb   : > { %v1642_v4 = vpop.f32.mrf.mxu0  ;;  %v1713_v6 = vpop.f32.mrf.mxu1 }
 0x7cc   : > { %v1791_v29 = vrot.slane %v1642_v4, 6  ;;  %v1808_v40 = vrot.slane %v1713_v6, 7 }
 0x7cd   : > { %v1644_v5 = vpop.f32.mrf.mxu0  ;;  %v1715_v11 = vpop.f32.mrf.mxu1 }
 0x7ce   : > { %v1792_v7 = vrot.slane %v1644_v5, 6  ;;  %v1809_v13 = vrot.slane %v1715_v11, 7  ;;  %v1793_v32 = vsel %vm4002_vm1, %v1791_v29, 0.0  ;;  %v1810_v46 = vsel %vm4010_vm2, %v1808_v40, 0.0  ;;  %v2133_v11 = vld [vmem:[#allocation14 + $0x70] sm:$0xff]  ;;  %v2123_v29 = vld [vmem:[#allocation14 + $0x20] sm:$0xff] }
 0x7cf   : > { %v1806_v56 = vadd.f32 %v1799_v53, %v1793_v32  ;;  %v2121_v53 = vld [vmem:[#allocation14 + $0x10] sm:$0xff]  ;;  %v2120_v32 = vld [vmem:[#allocation14 + $0x8] sm:$0xff]  ;;  %v2119_v40 = vld [vmem:[#allocation14] sm:$0xff] }
 0x7d0   : > { %v1794_v12 = vsel %vm4002_vm1, %v1792_v7, 0.0  ;;  %v1811_v15 = vsel %vm4010_vm2, %v1809_v13, 0.0  ;;  %v2131_v13 = vld [vmem:[#allocation14 + $0x60] sm:$0xff] }
 0x7d1   : > { %v1807_v14 = vadd.f32 %v1803_v10, %v1794_v12  ;;  %v1812_v57 = vadd.f32 %v1810_v46, %v1806_v56  ;;  %v2134_v10 = vld [vmem:[#allocation14 + $0x78] sm:$0xff]  ;;  %v2132_v12 = vld [vmem:[#allocation14 + $0x68] sm:$0xff] }
 0x7d3   : > { %v1813_v17 = vadd.f32 %v1811_v15, %v1807_v14  ;;  %v2130_v14 = vld [vmem:[#allocation14 + $0x58] sm:$0xff]  ;;  %v2129_v15 = vld [vmem:[#allocation14 + $0x50] sm:$0xff] }
 0x7eb   : > { %v1784_v16 = vpop.f32.mrf.mxu0 }
 0x7ec   : > { %v1814_v28 = vadd.f32 %v1812_v57, %v1784_v16  ;;  %v2128_v16 = vld [vmem:[#allocation14 + $0x48] sm:$0xff] }
 0x7ed   : > { %v1786_v18 = vpop.f32.mrf.mxu0 }
 0x7ee   : > { %v1815_v19 = vadd.f32 %v1813_v17, %v1786_v18  ;;  %v2127_v17 = vld [vmem:[#allocation14 + $0x40] sm:$0xff]  ;;  %v2126_v18 = vld [vmem:[#allocation14 + $0x38] sm:$0xff] }
 0x7f0   : > { %v2471_v20 = vmul.f32 -1.442695, %v1815_v19  ;;  %v2125_v19 = vld [vmem:[#allocation14 + $0x30] sm:$0xff] }
 0x7f2   : > { %3127 = vpow2.f32 %v2471_v20 }
 0x7ff   : > { %v3128_v23 = vpop.eup %3127 }
 0x800   : > { %v1819_v27 = vadd.f32 1.0, %v3128_v23 }
 0x802   : > { %3129 = vrcp.f32 %v1819_v27  ;;  %v2124_v27 = vld [vmem:[#allocation14 + $0x28] sm:$0xff] }
 0x80f   : > { %v3130_v58 = vpop.eup %3129 }
 0x810   : > { %v4309_v54 = vmul.f32 %v3130_v58, %v1814_v28 }
 0x812   : > { %2859 = vmatmul.mubr.f32.vlgmr.msra.gmra.mxu1 %v4309_v54 }
 0x813   : > { %2897 = vmatpush3.msra.mxu1 %v4063_v44  ;;  %2928 = vmatprep.mubr.msk.f32.mxu1 %vm3475_vm0, %v4609_v36 }
 0x814   : > { %2898 = vmatprep.subr.mxu1 %v4609_v36 }
 0x815   : > { %2899 = vmatpush3.msra.mxu1 %v4066_v43  ;;  %v4616_v43 = vld [vmem:[#allocation32_spill] sm:$0xff] }
 0x816   : > { %2900 = vmatprep.subr.mxu1 %v4609_v36 }
 0x817   : > { %2901 = vmatpush3.msra.mxu1 %v4071_v21 }
 0x818   : > { %2902 = vmatprep.subr.mxu1 %v4609_v36 }
 0x819   : > { %2903 = vmatpush3.msra.mxu1 %v4076_v45 }
 0x81a   : > { %2904 = vmatprep.subr.mxu1 %v4609_v36 }
 0x81b   : > { %2905 = vmatpush3.msra.mxu1 %v4081_v47  ;;  %v3135_v47 = vld [vmem:[%s546_s26] sm:$0xff]  ;;  %s643_s26 = scalar_lea.vmem [#allocation17], %s3801_s24 }
 0x81c   : > { %2906 = vmatprep.subr.mxu1 %v4609_v36  ;;  %s2246_s23 = sshll.u32 %s643_s26, 4  ;;  %s2247_s23 = int_to_ptr.vmem [resolvable:$true] %s2246_s23 }
 0x81d   : > { %2907 = vmatpush3.msra.mxu1 %v4086_v48  ;;  %s3350_s10 = scalar_lea.vmem %s2247_s23, 128  ;;  %p3357_p7 = scmp.lt.s32.totalorder %s2247_s23, %s3355_s29 }
 0x81e   : > { %2908 = vmatprep.subr.mxu1 %v4609_v36  ;;  %p3351_p6 = scmp.ne.s32.totalorder %s2247_s23, %s3350_s10  ;;  %p3358_p8 = scmp.lt.s32.totalorder %s3356_s4, %s3350_s10 }
 0x81f   : > { %2909 = vmatpush3.msra.mxu1 %v4091_v49 }
 0x820   : > { %2910 = vmatprep.subr.mxu1 %v4609_v36  ;;  %p3352_p4 = pnand %p3351_p6, %p4636_p1  ;;  %p3359_p3 = por %p3358_p8, %p3357_p7 }
 0x821   : > { %2911 = vmatpush3.msra.mxu1 %v4096_v50  ;;  %v4617_v50 = vld [vmem:[#allocation37_spill] sm:$0xff] }
 0x822   : > { %2912 = vmatprep.subr.mxu1 %v4609_v36  ;;  %p3353_p11 = pneg %p3352_p4 }
 0x823   : > { %2913 = vmatpush3.msra.mxu1 %v4106_v55  ;;  %v4618_v55 = vld [vmem:[#allocation38_spill] sm:$0xff] }
 0x824   : > { %2914 = vmatprep.subr.mxu1 %v4609_v36  ;;  %p3360_p12 = pnand %p3359_p3, %p3353_p11 }
 0x825   : > { %2915 = vmatpush3.msra.mxu1 %v4109_v25  ;;  %v4619_v25 = vld [vmem:[#allocation39_spill] sm:$0xff] }
 0x826   : > { %2916 = vmatprep.subr.mxu1 %v4609_v36 }
 0x827   : > { %2917 = vmatpush3.msra.mxu1 %v4114_v33  ;;  %v4620_v33 = vld [vmem:[#allocation40_spill] sm:$0xff] }
 0x828   : > { %2918 = vmatprep.subr.mxu1 %v4609_v36 }
 0x829   : > { %2919 = vmatpush3.msra.mxu1 %v4119_v34  ;;  %v4621_v34 = vld [vmem:[#allocation41_spill] sm:$0xff] }
 0x82a   : > { %2920 = vmatprep.subr.mxu1 %v4609_v36 }
 0x82b   : > { %2921 = vmatpush3.msra.mxu1 %v4124_v35  ;;  %v4622_v35 = vld [vmem:[#allocation42_spill] sm:$0xff] }
 0x82c   : > { %2922 = vmatprep.subr.mxu1 %v4609_v36 }
 0x82d   : > { %2923 = vmatpush3.msra.mxu1 %v4613_v24 }
 0x82e   : > { %2924 = vmatprep.subr.mxu1 %v4609_v36 }
 0x82f   : > { %2925 = vmatpush3.msra.mxu1 %v4614_v31 }
 0x830   : > { %2926 = vmatprep.subr.mxu1 %v4609_v36 }
 0x831   : > { %2927 = vmatpush3.msra.mxu1 %v4615_v37 }
 0x832   : > { %2966 = vmatprep.subr.mxu1 %v4609_v36 }
 0x8d2   : > { %v1889_v44 = vpop.f32.mrf.mxu1 }
 0x8d3   : > { %v1890_v21 = vadd.f32 %v4616_v43, %v1889_v44 }
 0x8d4   : > { %v2860_v45 = vpop.f32.mrf.mxu1 }
 0x8d5   : > { %v1893_v48 = vadd.f32 %v3135_v47, %v1890_v21 }
 0x8d7   : > { %v1894_v49 = vmul.f32 0.70710677, %v1893_v48 }
 0x8d9   : > { %2894 = vmatmul.mubr.f32.vlgmr.msra.gmra.mxu0 %v1894_v49 }
 0x8da   : > { %2932 = vmatpush3.msra.mxu0 %v4617_v50  ;;  %2963 = vmatprep.mubr.msk.f32.mxu0 %vm3475_vm0, %v4609_v36 }
 0x8db   : > { %2933 = vmatprep.subr.mxu0 %v4609_v36 }
 0x8dc   : > { %2934 = vmatpush3.msra.mxu0 %v4618_v55 }
 0x8dd   : > { %2935 = vmatprep.subr.mxu0 %v4609_v36 }
 0x8de   : > { %2936 = vmatpush3.msra.mxu0 %v4619_v25 }
 0x8df   : > { %2937 = vmatprep.subr.mxu0 %v4609_v36 }
 0x8e0   : > { %2938 = vmatpush3.msra.mxu0 %v4620_v33 }
 0x8e1   : > { %2939 = vmatprep.subr.mxu0 %v4609_v36 }
 0x8e2   : > { %2940 = vmatpush3.msra.mxu0 %v4621_v34 }
 0x8e3   : > { %2941 = vmatprep.subr.mxu0 %v4609_v36 }
 0x8e4   : > { %2942 = vmatpush3.msra.mxu0 %v4622_v35 }
 0x8e5   : > { %2943 = vmatprep.subr.mxu0 %v4609_v36 }
 0x8e6   : > { %2944 = vmatpush3.msra.mxu0 %v4623_v59 }
 0x8e7   : > { %2945 = vmatprep.subr.mxu0 %v4609_v36 }
 0x8e8   : > { %2946 = vmatpush3.msra.mxu0 %v4624_v39 }
 0x8e9   : > { %2947 = vmatprep.subr.mxu0 %v4609_v36 }
 0x8ea   : > { %2948 = vmatpush3.msra.mxu0 %v4625_v60 }
 0x8eb   : > { %2949 = vmatprep.subr.mxu0 %v4609_v36 }
 0x8ec   : > { %2950 = vmatpush3.msra.mxu0 %v4626_v0 }
 0x8ed   : > { %2951 = vmatprep.subr.mxu0 %v4609_v36 }
 0x8ee   : > { %2952 = vmatpush3.msra.mxu0 %v4627_v61 }
 0x8ef   : > { %2953 = vmatprep.subr.mxu0 %v4609_v36 }
 0x8f0   : > { %2954 = vmatpush3.msra.mxu0 %v4628_v42 }
 0x8f1   : > { %2955 = vmatprep.subr.mxu0 %v4609_v36 }
 0x8f2   : > { %2956 = vmatpush3.msra.mxu0 %v4629_v62 }
 0x8f3   : > { %2957 = vmatprep.subr.mxu0 %v4609_v36 }
 0x8f4   : > { %2958 = vmatpush3.msra.mxu0 %v4630_v38 }
 0x8f5   : > { %2959 = vmatprep.subr.mxu0 %v4609_v36 }
 0x8f6   : > { %2960 = vmatpush3.msra.mxu0 %v4631_v63 }
 0x8f7   : > { %2961 = vmatprep.subr.mxu0 %v4609_v36 }
 0x8f8   : > { %2962 = vmatpush3.msra.mxu0 %v4632_v41 }
 0x999   : > { %v1961_v1 = vpop.f32.mrf.mxu0 }
 0x99a   : > { %v1965_v2 = vsel %vm1322_vm3, %v1961_v1, -1e+30 }
 0x99b   : > { %1966 = vmax.xlane.f32.xlu1 %v1965_v2  ;;  %v2895_v22 = vpop.f32.mrf.mxu0 }
 0xa24   : > { %v1967_v3 = vpop.xlane.xlu1 %1966 }
 0xa25   : > { %v1968_v4 = vsub.f32 %v1965_v2, %v1967_v3 }
 0xa27   : > { %v1969_v5 = vmul.f32 1.442695, %v1968_v4 }
 0xa29   : > { %3131 = vpow2.f32 %v1969_v5 }
 0xa36   : > { %v3132_v6 = vpop.eup %3131 }
 0xa37   : > { %1971 = vadd.xlane.f32.xlu1 %v3132_v6 }
 0xac0   : > { %v1972_v7 = vpop.xlane.xlu1 %1971 }
 0xac1   : > { %3133 = vrcp.f32 %v1972_v7 }
 0xace   : > { %v3134_v8 = vpop.eup %3133 }
 0xacf   : > { %v1974_v9 = vmul.f32 %v3134_v8, %v3132_v6 }
 0xad1   : > { %2929 = vmatmul.mubr.f32.vlgmr.msra.gmra.mxu1 %v1974_v9  ;;  %2213 = vst [vmem:[%s643_s26] sm:$0xff] %v1974_v9 }
 0xad2   : > { %2998 = vmatprep.mubr.msk.f32.mxu1 %vm3475_vm0, %v4609_v36  ;;  %2967 = vmatpush3.msra.mxu1 %v2134_v10 }
 0xad3   : > { %2968 = vmatprep.subr.mxu1 %v4609_v36 }
 0xad4   : > { %2969 = vmatpush3.msra.mxu1 %v2133_v11 }
 0xad5   : > { %2970 = vmatprep.subr.mxu1 %v4609_v36 }
 0xad6   : > { %2971 = vmatpush3.msra.mxu1 %v2132_v12 }
 0xad7   : > { %2972 = vmatprep.subr.mxu1 %v4609_v36 }
 0xad8   : > { %2973 = vmatpush3.msra.mxu1 %v2131_v13 }
 0xad9   : > { %2974 = vmatprep.subr.mxu1 %v4609_v36 }
 0xada   : > { %2975 = vmatpush3.msra.mxu1 %v2130_v14 }
 0xadb   : > { %2976 = vmatprep.subr.mxu1 %v4609_v36 }
 0xadc   : > { %2977 = vmatpush3.msra.mxu1 %v2129_v15 }
 0xadd   : > { %2978 = vmatprep.subr.mxu1 %v4609_v36 }
 0xade   : > { %2979 = vmatpush3.msra.mxu1 %v2128_v16 }
 0xadf   : > { %2980 = vmatprep.subr.mxu1 %v4609_v36 }
 0xae0   : > { %2981 = vmatpush3.msra.mxu1 %v2127_v17 }
 0xae1   : > { %2982 = vmatprep.subr.mxu1 %v4609_v36 }
 0xae2   : > { %2983 = vmatpush3.msra.mxu1 %v2126_v18 }
 0xae3   : > { %2984 = vmatprep.subr.mxu1 %v4609_v36 }
 0xae4   : > { %2985 = vmatpush3.msra.mxu1 %v2125_v19 }
 0xae5   : > { %2986 = vmatprep.subr.mxu1 %v4609_v36 }
 0xae6   : > { %2987 = vmatpush3.msra.mxu1 %v2124_v27 }
 0xae7   : > { %2988 = vmatprep.subr.mxu1 %v4609_v36 }
 0xae8   : > { %2989 = vmatpush3.msra.mxu1 %v2123_v29 }
 0xae9   : > { %2990 = vmatprep.subr.mxu1 %v4609_v36 }
 0xaea   : > { %2991 = vmatpush3.msra.mxu1 %v2122_v30 }
 0xaeb   : > { %2992 = vmatprep.subr.mxu1 %v4609_v36 }
 0xaec   : > { %2993 = vmatpush3.msra.mxu1 %v2121_v53 }
 0xaed   : > { %2994 = vmatprep.subr.mxu1 %v4609_v36 }
 0xaee   : > { %2995 = vmatpush3.msra.mxu1 %v2120_v32 }
 0xaef   : > { %2996 = vmatprep.subr.mxu1 %v4609_v36 }
 0xaf0   : > { %2997 = vmatpush3.msra.mxu1 %v2119_v40 }
 0xb91   : > { %v2041_v20 = vpop.f32.mrf.mxu1 }
 0xb92   : > { %2964 = vmatmul.mubr.f32.vlgmr.msra.gmra.mxu0 %v2041_v20 }
 0xb93   : > { %v2930_v23 = vpop.f32.mrf.mxu1 }
 0xc52   : > { %v2111_v56 = vpop.f32.mrf.mxu0 }
 0xc53   : > { %v2112_v46 = vadd.f32 %v4214_v52, %v2111_v56 }
 0xc54   : > { %v2965_v57 = vpop.f32.mrf.mxu0 }
 0xc55   : > { %v2115_v28 = vadd.f32 %v2112_v46, %v4309_v54 }
 0xc57   : > { %v2116_v58 = vmul.f32 0.70710677, %v2115_v28 }
 0xc59   : > { %v2117_v24 = vadd.f32 %v2116_v58, %v4219_v51 }
 0xc5b   : > { %v2118_v31 = vmul.f32 0.70710677, %v2117_v24 }
 0xc5d   : > { %2999 = vmatmul.mubr.f32.vlgmr.msra.gmra.mxu1 %v2118_v31 }
 0xc5e   : > { %3363 = shalt.err (!%p3360_p12)
}
 0xc5f   : > { %s3364_s18 = scalar_lea.hbm %s2244_s22, 128  ;;  %s3368_s6 = scalar_lea.hbm %s4635_s17, 256 }
 0xc60   : > { %p3365_p2 = scmp.ne.s32.totalorder %s2244_s22, %s3364_s18  ;;  %p3369_p10 = scmp.lt.s32.totalorder %s2244_s22, %s4635_s17 }
 0xc61   : > { %p3370_p0 = scmp.lt.s32.totalorder %s3368_s6, %s3364_s18 }
 0xc62   : > { %p3366_p13 = pnand %p3365_p2, %p4636_p1 }
 0xc63   : > { %p3371_p5 = por %p3370_p0, %p3369_p10 }
 0xc64   : > { %p3367_p9 = pneg %p3366_p13 }
 0xc66   : > { %p3372_p6 = pnand %p3371_p5, %p3367_p9 }
 0xc68   : > { %3375 = shalt.err (!%p3372_p6)
}
 0xc69   : > { %3028 = dma.vmem_to_hbm [thread:$0]  (%p4636_p1), %s2247_s23, 128, %s2244_s22, %s2220_s21  }
 0xc6a   : > { %s4637_s3 = sld [smem:[#allocation60_spill]]  ;;  %s636_s7 = scalar_lea.vmem [#allocation16], %s3801_s24 }
 0xc6b   : > { %s2233_s10 = sshll.u32 %s636_s7, 4  ;;  %s4638_s4 = sld [smem:[#allocation61_spill]]  ;;  %s2234_s10 = int_to_ptr.vmem [resolvable:$true] %s2233_s10 }
 0xc6c   : > { %s2215_s12 = scalar_lea.sflag [#allocation4], %s3798_s14  ;;  %s3376_s25 = scalar_lea.vmem %s2234_s10, 128 }
 0xc6d   : > { %p3377_p4 = scmp.ne.s32.totalorder %s2234_s10, %s3376_s25  ;;  %s3477_s22 = smov [#allocation16]  }
 0xc6e   : > { %s3380_s24 = sshll.u32 %s3477_s22, 4  ;;  %s3381_s24 = int_to_ptr.vmem [resolvable:$false] %s3380_s24 }
 0xc6f   : > { %p3378_p11 = pnand %p3377_p4, %p4636_p1  ;;  %s3382_s23 = scalar_lea.vmem %s3381_s24, 256 }
 0xc70   : > { %v2472_v36 = vld [vmem:[%s4637_s3] ss:$0 sm:$0xff]  ;;  %p3383_p8 = scmp.lt.s32.totalorder %s2234_s10, %s3381_s24  ;;  %p3384_p3 = scmp.lt.s32.totalorder %s3382_s23, %s3376_s25 }
 0xc71   : > { %s4437_s18 = scalar_lea.hbm %s4638_s4, %s2475_s27  ;;  %p3379_p7 = pneg %p3378_p11 }
 0xc72   : > { %p3385_p12 = por %p3384_p3, %p3383_p8 }
 0xc74   : > { %p3386_p2 = pnand %p3385_p12, %p3379_p7 }
 0xd1d   : > { %v2208_v52 = vpop.f32.mrf.mxu1 }
 0xd1e   : > { %v2209_v51 = vadd.f32 %v2472_v36, %v2208_v52 }
 0xd1f   : > { %v3000_v54 = vpop.f32.mrf.mxu1 }
 0xd20   : > { %2212 = vst [vmem:[%s636_s7] sm:$0xff] %v2209_v51 }
 0xd21   : > { %3389 = shalt.err (!%p3386_p2)
}
 0xd22   : > { %s3390_s19 = scalar_lea.hbm %s4437_s18, 128  ;;  %s3394_s21 = scalar_lea.hbm %s4638_s4, 256 }
 0xd23   : > { %p3391_p13 = scmp.ne.s32.totalorder %s4437_s18, %s3390_s19  ;;  %p3395_p0 = scmp.lt.s32.totalorder %s4437_s18, %s4638_s4 }
 0xd24   : > { %p3396_p5 = scmp.lt.s32.totalorder %s3394_s21, %s3390_s19 }
 0xd25   : > { %p3392_p9 = pnand %p3391_p13, %p4636_p1 }
 0xd26   : > { %p3397_p6 = por %p3396_p5, %p3395_p0 }
 0xd27   : > { %p3393_p10 = pneg %p3392_p9 }
 0xd29   : > { %p3398_p4 = pnand %p3397_p6, %p3393_p10 }
 0xd2b   : > { %3401 = shalt.err (!%p3398_p4)
}
 0xd2c   : > { %3027 = dma.vmem_to_hbm [thread:$0]  (%p4636_p1), %s2234_s10, 128, %s4437_s18, %s2215_s12  }
 0xd2d PF: > { %s4639_s28 = sld [smem:[#allocation26_spill]]  ;;  %p4642_p7 = scmp.ge.s32.totalorder %s3460_s16, 2 }
 0xd2e   : > { %s4640_s13 = sld [smem:[#allocation31_spill]] }
 0xd33   : > { %s2258_s26 = sand.u32 1, %s4639_s28  }
 0xd34   : > { %p4641_p11 = scmp.ne.s32.totalorder %s4640_s13, 0  ;;  %s2259_s3 = scalar_lea.sflag [#allocation4], %s2258_s26 }
 0xd36   : > { %p3058_p8 = pnand %p4642_p7, %p4641_p11 }
 0xd38   : > { %p3059_p3 = pneg %p3058_p8 }
 0xd3a   : > { %3439 = dma.done.wait (%p3059_p3), %s2259_s3, 128  }
 0xd3b   : > { %3441 = vsyncadd (%p3059_p3), %s2259_s3, 4294967168  ;;  %s2268_s7 = scalar_lea.sflag [#allocation18], %s2258_s26 }
 0xd3c   : > { %3443 = dma.done.wait (%p3059_p3), %s2268_s7, 128  }
 0xd3d   : > { %3445 = vsyncadd (%p3059_p3), %s2268_s7, 4294967168  ;;  %s4643_s16 = sld [smem:[#allocation28_spill]]  ;;  %s4646_s29 = smov %s3452_s30 }
 0xd3e   : > { %s4644_s20 = sld [smem:[#allocation27_spill]] }
 0xd3f   : > { %s4645_s15 = sld [smem:[#allocation30_spill]] }
 0xd43   : > { %p37_p1 = scmp.ge.s32.totalorder %s4643_s16, 4  }
 0xd44   : > { %s4647_s30 = smov %s4644_s20 }
 0xd45   :  { %39 = sbr.rel (!%p37_p1) target bundleno = 23 (0x17), region = 180 }
 0xd4a   :  { %2273 = vsyncpa [#allocation3], 1 }
 0xd4b   :  { %2275 = vsyncpa [#allocation3 + $0x1], 1 }
 0xd4c   :  { %2276 = vsyncpa [#allocation6], 1 }
 0xd4d   :  { %2278 = vsyncpa [#allocation6 + $0x1], 1 }
 0xd4e   :  { %2279 = vsyncpa [#allocation9], 1 }
 0xd4f   :  { %2280 = vsyncpa [#allocation12], 1 }
 0xd50   :  { %2281 = vsyncpa [#allocation15], 1 }
 0xd51   :  { %2282 = vsyncpa [#allocation4], 1 }
 0xd52   :  { %2284 = vsyncpa [#allocation4 + $0x1], 1 }
 0xd53   :  { %2285 = vsyncpa [#allocation18], 1 }
 0xd54   :  { %2287 = vsyncpa [#allocation18 + $0x1], 1 }

</bundles_post_ra>
